<compile_context>
chip_gen: v7x
topology: tpu7x:2x2x1
jax: 0.10.0
libtpu: 0.0.40
codegen_flags: <defaults>
</compile_context>

<pallas_src>
import functools

import jax
import jax.numpy as jnp
from jax.experimental import pallas as pl
from jax.experimental.pallas import tpu as pltpu


# ---------------------------------------------------------------------------
# Fused encoder stack kernel.
# Grid = (num_batch_blocks, num_layers); program (b, l) applies layer l to a
# block of BT sequences.  The activation lives in the resident output VMEM
# block (constant output block index across the layer axis).
# ---------------------------------------------------------------------------
def encoder_stack_kernel(x_ref, wqkv_ref, wo_ref, w1_ref, w2_ref,
                         bqkv_ref, b1_ref, vecs_ref, o_ref, *, nhead):
    layer = pl.program_id(1)

    # First layer: seed the resident activation buffer with the input block.
    @pl.when(layer == 0)
    def _():
        o_ref[...] = x_ref[...]

    x = o_ref[...].astype(jnp.float32)                    # (BT, S, D) residual stream
    BT, S, D = x.shape
    H = nhead
    hd = D // H

    vecs = vecs_ref[0]                                    # (6, D) packed small params
    bo, g1, be1, b2, g2, be2 = (vecs[i:i + 1] for i in range(6))

    # ---- multi-head self-attention (batch flattened into M, bf16 MXU) ----
    xf = x.reshape(BT * S, D)
    qkv = jnp.dot(xf.astype(jnp.bfloat16), wqkv_ref[0],
                  preferred_element_type=jnp.float32) + bqkv_ref[0]       # (BT*S, 3D)

    def split_heads(col0):
        h = qkv[:, col0:col0 + D].reshape(BT, S, H, hd)
        return jnp.transpose(h, (0, 2, 1, 3)).reshape(BT * H, S, hd)

    q = split_heads(0)          # 1/sqrt(hd) already folded into wqkv/bqkv
    k = split_heads(D)
    v = split_heads(2 * D)

    s = jnp.einsum('nqd,nkd->nqk', q.astype(jnp.bfloat16), k.astype(jnp.bfloat16),
                   preferred_element_type=jnp.float32)                    # (BT*H, S, S)
    p = jnp.exp(s - jnp.max(s, axis=-1, keepdims=True))
    l = jnp.sum(p, axis=-1, keepdims=True)                                # (BT*H, S, 1)
    ctx = jnp.einsum('nqk,nkd->nqd', p.astype(jnp.bfloat16), v.astype(jnp.bfloat16),
                     preferred_element_type=jnp.float32)                  # (BT*H, S, hd)
    ctx = ctx * pl.reciprocal(l, approx=True)             # normalize after PV matmul
    attn = jnp.transpose(ctx.reshape(BT, H, S, hd), (0, 2, 1, 3)).reshape(BT * S, D)
    attn = jnp.dot(attn.astype(jnp.bfloat16), wo_ref[0],
                   preferred_element_type=jnp.float32) + bo

    # residual + LayerNorm1 (post-norm; dropout == identity in eval)
    h1 = xf + attn
    mu = jnp.mean(h1, axis=-1, keepdims=True)
    var = jnp.mean((h1 - mu) ** 2, axis=-1, keepdims=True)
    h1 = (h1 - mu) * jax.lax.rsqrt(var + 1e-5) * g1 + be1

    # ---- feed-forward (Linear -> ReLU -> Linear), bf16 matmuls ----
    # TODO(synk): for very large S / dim_ff on v7x (64 MiB VMEM), tile the FFN
    # over dim_ff with an f32 accumulator and tile attention flash-style over KV.
    f = jnp.dot(h1.astype(jnp.bfloat16), w1_ref[0],
                preferred_element_type=jnp.float32) + b1_ref[0]
    f = jnp.maximum(f, 0.0)
    f = jnp.dot(f.astype(jnp.bfloat16), w2_ref[0],
                preferred_element_type=jnp.float32) + b2

    # residual + LayerNorm2
    h2 = h1 + f
    mu2 = jnp.mean(h2, axis=-1, keepdims=True)
    var2 = jnp.mean((h2 - mu2) ** 2, axis=-1, keepdims=True)
    out = (h2 - mu2) * jax.lax.rsqrt(var2 + 1e-5) * g2 + be2

    o_ref[...] = out.reshape(BT, S, D).astype(o_ref.dtype)


def encoder_stack(x, params, nhead, *, max_bt=8):
    B, S, D = x.shape
    L = params['wqkv'].shape[0]
    F = params['w1'].shape[-1]

    # Number of batch blocks: keep >= 2 when possible (megacore parallel axis),
    # but cap the per-block batch so intermediates stay in VMEM.
    nb = max(2 if B >= 2 else 1, pl.cdiv(B, max_bt))
    BT = pl.cdiv(B, nb)
    Bp = nb * BT
    if Bp != B:
        x = jnp.pad(x, ((0, Bp - B), (0, 0), (0, 0)))

    def w_spec(shape):
        nd = len(shape)
        return pl.BlockSpec((1,) + shape, lambda b, l, _nd=nd: (l,) + (0,) * _nd)

    kern = functools.partial(encoder_stack_kernel, nhead=nhead)
    out = pl.pallas_call(
        kern,
        out_shape=jax.ShapeDtypeStruct((Bp, S, D), x.dtype),
        grid=(nb, L),
        in_specs=[
            pl.BlockSpec((BT, S, D), lambda b, l: (b, 0, 0)),   # x (read at layer 0)
            w_spec((D, 3 * D)),                                 # wqkv (bf16, Q pre-scaled)
            w_spec((D, D)),                                     # wo   (bf16)
            w_spec((D, F)),                                     # w1   (bf16)
            w_spec((F, D)),                                     # w2   (bf16)
            w_spec((1, 3 * D)),                                 # bqkv (f32)
            w_spec((1, F)),                                     # b1   (f32)
            w_spec((6, D)),                                     # packed vectors (f32)
        ],
        out_specs=pl.BlockSpec((BT, S, D), lambda b, l: (b, 0, 0)),
        compiler_params=pltpu.CompilerParams(
            dimension_semantics=("parallel", "arbitrary"),
            vmem_limit_bytes=64 * 1024 * 1024,
        ),
    )(x, params['wqkv'], params['wo'], params['w1'], params['w2'],
      params['bqkv'], params['b1'], params['vecs'])
    return out[:B] if Bp != B else out


# ---------------------------------------------------------------------------
# Final projection fc_out (Linear d_model -> vocab), M = B*S rows, vocab tiled.
# ---------------------------------------------------------------------------
def fc_out_kernel(x_ref, w_ref, b_ref, o_ref):
    o_ref[...] = (jnp.dot(x_ref[...].astype(jnp.bfloat16), w_ref[...],
                          preferred_element_type=jnp.float32)
                  + b_ref[...]).astype(o_ref.dtype)


def _divisor_tile(total, max_tile, quantum):
    """Largest multiple of `quantum` that is <= max_tile and divides `total`."""
    t = min(max_tile, total)
    t -= t % quantum
    t = max(t, quantum)
    while t > quantum and total % t:
        t -= quantum
    return t


def fc_out(x, w, b, *, tile_m=256, tile_n=1024):
    B, S, D = x.shape
    V = w.shape[1]
    # Pad vocab to a multiple of 128 (normally already done at init — no-op).
    Vp = ((V + 127) // 128) * 128
    if Vp != V:
        w = jnp.pad(w, ((0, 0), (0, Vp - V)))
        b = jnp.pad(b, ((0, 0), (0, Vp - V)))

    M = B * S
    xf = x.reshape(M, D)
    Mp = ((M + 7) // 8) * 8
    if Mp != M:
        xf = jnp.pad(xf, ((0, Mp - M), (0, 0)))

    TM = _divisor_tile(Mp, tile_m, 8)
    TN = _divisor_tile(Vp, tile_n, 128)

    out = pl.pallas_call(
        fc_out_kernel,
        out_shape=jax.ShapeDtypeStruct((Mp, Vp), x.dtype),
        grid=(Mp // TM, Vp // TN),
        in_specs=[
            pl.BlockSpec((TM, D), lambda i, j: (i, 0)),
            pl.BlockSpec((D, TN), lambda i, j: (0, j)),
            pl.BlockSpec((1, TN), lambda i, j: (0, j)),
        ],
        out_specs=pl.BlockSpec((TM, TN), lambda i, j: (i, j)),
        compiler_params=pltpu.CompilerParams(
            dimension_semantics=("parallel", "parallel"),
            vmem_limit_bytes=64 * 1024 * 1024,
        ),
    )(xf, w, b)
    return out[:M].reshape(B, S, Vp)


# ---------------------------------------------------------------------------
# Full forward
# ---------------------------------------------------------------------------
def transformer_forward(token_ids, params, nhead):
    B, S = token_ids.shape
    V = params['token_emb'].shape[0]
    assert S <= params['pos_emb'].shape[1], "sequence longer than pos_emb table"
    # Embedding gather + positional add (plain-JAX glue).
    x = params['token_emb'][token_ids] + params['pos_emb'][:, :S, :]
    x = encoder_stack(x.astype(jnp.float32), params, nhead)
    logits = fc_out(x, params['fc_w'], params['fc_b'])
    return logits[:, :, :V]          # slice off vocab padding


# ---------------------------------------------------------------------------
# Deterministic parameter construction (layer weights stacked along axis 0).
# Linear weights stored pre-transposed as [in, out] (== PyTorch x @ W.T).
# Matmul weights are bf16; biases / LayerNorm params stay f32.
# 1/sqrt(head_dim) is folded into the Q columns of wqkv / bqkv.
# fc weights are padded up to a multiple of 128 on the vocab axis.
# TODO(synk): per-generation low-precision weight streams (int8 on v5e, fp8 on
# v7x) with per-channel scales would further halve the weight HBM traffic.
# ---------------------------------------------------------------------------
def init_params(key, vocab_size, d_model, nhead, num_layers, dim_ff, max_len=1000):
    D, F, L = d_model, dim_ff, num_layers
    hd = D // nhead
    scale = 1.0 / float(hd) ** 0.5
    f32, bf16 = jnp.float32, jnp.bfloat16
    std = 0.02
    keys = jax.random.split(key, 6)

    wqkv = std * jax.random.normal(keys[1], (L, D, 3 * D), f32)
    wqkv = wqkv.at[:, :, :D].multiply(scale)             # fold attention scale into Q
    bqkv = jnp.zeros((L, 1, 3 * D), f32)
    bqkv = bqkv.at[:, :, :D].multiply(scale)

    # packed small per-layer vectors: [bo, gamma1, beta1, b2, gamma2, beta2]
    vecs = jnp.stack([
        jnp.zeros((L, D), f32),   # bo
        jnp.ones((L, D), f32),    # gamma1
        jnp.zeros((L, D), f32),   # beta1
        jnp.zeros((L, D), f32),   # b2
        jnp.ones((L, D), f32),    # gamma2
        jnp.zeros((L, D), f32),   # beta2
    ], axis=1)                    # (L, 6, D)

    Vp = ((vocab_size + 127) // 128) * 128
    fc_w = std * jax.random.normal(keys[5], (D, vocab_size), f32)
    fc_w = jnp.pad(fc_w, ((0, 0), (0, Vp - vocab_size)))

    return {
        'token_emb': jax.random.normal(keys[0], (vocab_size, D), f32),
        'pos_emb': jnp.zeros((1, max_len, D), f32),       # nn.Parameter(zeros(1,1000,D))
        'wqkv': wqkv.astype(bf16),
        'wo':   (std * jax.random.normal(keys[2], (L, D, D), f32)).astype(bf16),
        'w1':   (std * jax.random.normal(keys[3], (L, D, F), f32)).astype(bf16),
        'w2':   (std * jax.random.normal(keys[4], (L, F, D), f32)).astype(bf16),
        'bqkv': bqkv,
        'b1':   jnp.zeros((L, 1, F), f32),
        'vecs': vecs,
        'fc_w': fc_w.astype(bf16),                        # (D, Vp) padded
        'fc_b': jnp.zeros((1, Vp), f32),
    }


if __name__ == "__main__":
    # Small config consistent with the module's constructor args.
    vocab_size, d_model, nhead, num_layers = 128, 32, 4, 2
    dim_ff = 2048  # nn.TransformerEncoderLayer default dim_feedforward
    B, S = 2, 8

    key = jax.random.PRNGKey(0)
    k_par, k_ids = jax.random.split(key)
    params = init_params(k_par, vocab_size, d_model, nhead, num_layers, dim_ff)
    token_ids = jax.random.randint(k_ids, (B, S), 0, vocab_size, dtype=jnp.int32)

    fwd = jax.jit(functools.partial(transformer_forward, nhead=nhead))
    logits = fwd(token_ids, params)
    jax.block_until_ready(logits)
    assert logits.shape == (B, S, vocab_size)
    print("KERNEL_OK")
</pallas_src>

<mosaic_0001>
module attributes {stable_mosaic.version = 11 : i64} {
  func.func @fc_out_kernel(%arg0: i32, %arg1: i32, %arg2: memref<16x32xf32, #tpu.memory_space<vmem>>, %arg3: memref<32x128xbf16, #tpu.memory_space<vmem>>, %arg4: memref<1x128xf32, #tpu.memory_space<vmem>>, %arg5: memref<16x128xf32, #tpu.memory_space<vmem>>) attributes {dimension_semantics = [#tpu.dimension_semantics<parallel>, #tpu.dimension_semantics<parallel>], iteration_bounds = array<i64: 1, 1>, scalar_prefetch = 0 : i64, scratch_operands = 0 : i64, tpu.core_type = #tpu.core_type<tc>, window_params = [{transform_indices = @transform_0, window_bounds = array<i64: 16, 32>}, {transform_indices = @transform_1, window_bounds = array<i64: 32, 128>}, {transform_indices = @transform_2, window_bounds = array<i64: 1, 128>}, {transform_indices = @transform_3, window_bounds = array<i64: 16, 128>}]} {
    %c0 = arith.constant 0 : index
    %c0_0 = arith.constant 0 : index
    %0 = vector.load %arg2[%c0, %c0_0] : memref<16x32xf32, #tpu.memory_space<vmem>>, vector<16x32xf32>
    %1 = arith.truncf %0 : vector<16x32xf32> to vector<16x32xbf16>
    %c0_1 = arith.constant 0 : index
    %c0_2 = arith.constant 0 : index
    %2 = vector.load %arg3[%c0_1, %c0_2] : memref<32x128xbf16, #tpu.memory_space<vmem>>, vector<32x128xbf16>
    %cst = arith.constant dense<0.000000e+00> : vector<16x128xf32>
    %3 = tpu.matmul %1, %2, %cst {dimension_numbers = #tpu.dot_dimension_numbers<[1], [0], [0], [1], [0, 0, 1, 1], [], []>} : vector<16x32xbf16>, vector<32x128xbf16>, vector<16x128xf32> -> vector<16x128xf32>
    %c0_3 = arith.constant 0 : index
    %c0_4 = arith.constant 0 : index
    %4 = vector.load %arg4[%c0_3, %c0_4] : memref<1x128xf32, #tpu.memory_space<vmem>>, vector<1x128xf32>
    %5 = vector.broadcast %4 : vector<1x128xf32> to vector<16x128xf32>
    %6 = arith.addf %3, %5 : vector<16x128xf32>
    %c0_5 = arith.constant 0 : index
    %c0_6 = arith.constant 0 : index
    %7 = vector.load %arg5[%c0_5, %c0_6] : memref<16x128xf32, #tpu.memory_space<vmem>>, vector<16x128xf32>
    tpu.vector_store %arg5[%c0_5, %c0_6], %6 {strides = array<i32>} : memref<16x128xf32, #tpu.memory_space<vmem>>, vector<16x128xf32>,
    return
  }
  func.func @transform_0(%arg0: i32, %arg1: i32) -> (i32, i32) {
    %c0_i32 = arith.constant 0 : i32
    %c0_i32_0 = arith.constant 0 : i32
    return %arg0, %c0_i32 : i32, i32
  }
  func.func @transform_1(%arg0: i32, %arg1: i32) -> (i32, i32) {
    %c0_i32 = arith.constant 0 : i32
    %c0_i32_0 = arith.constant 0 : i32
    return %c0_i32, %arg1 : i32, i32
  }
  func.func @transform_2(%arg0: i32, %arg1: i32) -> (i32, i32) {
    %c0_i32 = arith.constant 0 : i32
    %c0_i32_0 = arith.constant 0 : i32
    return %c0_i32, %arg1 : i32, i32
  }
  func.func @transform_3(%arg0: i32, %arg1: i32) -> (i32, i32) {
    %c0_i32 = arith.constant 0 : i32
    return %arg0, %arg1 : i32, i32
  }
}

module attributes {stable_mosaic.version = 11 : i64} {
  func.func @encoder_stack_kernel(%arg0: i32, %arg1: i32, %arg2: memref<1x8x32xf32, #tpu.memory_space<vmem>>, %arg3: memref<1x32x96xbf16, #tpu.memory_space<vmem>>, %arg4: memref<1x32x32xbf16, #tpu.memory_space<vmem>>, %arg5: memref<1x32x2048xbf16, #tpu.memory_space<vmem>>, %arg6: memref<1x2048x32xbf16, #tpu.memory_space<vmem>>, %arg7: memref<1x1x96xf32, #tpu.memory_space<vmem>>, %arg8: memref<1x1x2048xf32, #tpu.memory_space<vmem>>, %arg9: memref<1x6x32xf32, #tpu.memory_space<vmem>>, %arg10: memref<1x8x32xf32, #tpu.memory_space<vmem>>) attributes {dimension_semantics = [#tpu.dimension_semantics<parallel>, #tpu.dimension_semantics<arbitrary>], iteration_bounds = array<i64: 2, 2>, scalar_prefetch = 0 : i64, scratch_operands = 0 : i64, tpu.core_type = #tpu.core_type<tc>, window_params = [{transform_indices = @transform_0, window_bounds = array<i64: 1, 8, 32>}, {transform_indices = @transform_1, window_bounds = array<i64: 1, 32, 96>}, {transform_indices = @transform_2, window_bounds = array<i64: 1, 32, 32>}, {transform_indices = @transform_3, window_bounds = array<i64: 1, 32, 2048>}, {transform_indices = @transform_4, window_bounds = array<i64: 1, 2048, 32>}, {transform_indices = @transform_5, window_bounds = array<i64: 1, 1, 96>}, {transform_indices = @transform_6, window_bounds = array<i64: 1, 1, 2048>}, {transform_indices = @transform_7, window_bounds = array<i64: 1, 6, 32>}, {transform_indices = @transform_8, window_bounds = array<i64: 1, 8, 32>}]} {
    %c0_i32 = arith.constant 0 : i32
    %0 = arith.cmpi eq, %arg1, %c0_i32 : i32
    %1 = arith.extui %0 : i1 to i32
    %c0_i32_0 = arith.constant 0 : i32
    %2 = arith.cmpi ne, %1, %c0_i32_0 : i32
    scf.if %2 {
      %c0_45 = arith.constant 0 : index
      %c0_46 = arith.constant 0 : index
      %c0_47 = arith.constant 0 : index
      %122 = vector.load %arg2[%c0_45, %c0_46, %c0_47] : memref<1x8x32xf32, #tpu.memory_space<vmem>>, vector<1x8x32xf32>
      %c0_48 = arith.constant 0 : index
      %c0_49 = arith.constant 0 : index
      %c0_50 = arith.constant 0 : index
      %123 = vector.load %arg10[%c0_48, %c0_49, %c0_50] : memref<1x8x32xf32, #tpu.memory_space<vmem>>, vector<1x8x32xf32>
      tpu.vector_store %arg10[%c0_48, %c0_49, %c0_50], %122 {strides = array<i32>} : memref<1x8x32xf32, #tpu.memory_space<vmem>>, vector<1x8x32xf32>,
    } else {
    }
    %c0 = arith.constant 0 : index
    %c0_1 = arith.constant 0 : index
    %c0_2 = arith.constant 0 : index
    %3 = vector.load %arg10[%c0, %c0_1, %c0_2] : memref<1x8x32xf32, #tpu.memory_space<vmem>>, vector<1x8x32xf32>
    %c0_3 = arith.constant 0 : index
    %c0_4 = arith.constant 0 : index
    %c0_5 = arith.constant 0 : index
    %4 = vector.load %arg9[%c0_3, %c0_4, %c0_5] : memref<1x6x32xf32, #tpu.memory_space<vmem>>, vector<1x6x32xf32>
    %5 = vector.shape_cast %4 : vector<1x6x32xf32> to vector<6x32xf32>
    %6 = vector.extract_strided_slice %5 {offsets = [0, 0], sizes = [1, 32], strides = [1, 1]} : vector<6x32xf32> to vector<1x32xf32>
    %7 = vector.extract_strided_slice %5 {offsets = [1, 0], sizes = [1, 32], strides = [1, 1]} : vector<6x32xf32> to vector<1x32xf32>
    %8 = vector.extract_strided_slice %5 {offsets = [2, 0], sizes = [1, 32], strides = [1, 1]} : vector<6x32xf32> to vector<1x32xf32>
    %9 = vector.extract_strided_slice %5 {offsets = [3, 0], sizes = [1, 32], strides = [1, 1]} : vector<6x32xf32> to vector<1x32xf32>
    %10 = vector.extract_strided_slice %5 {offsets = [4, 0], sizes = [1, 32], strides = [1, 1]} : vector<6x32xf32> to vector<1x32xf32>
    %11 = vector.extract_strided_slice %5 {offsets = [5, 0], sizes = [1, 32], strides = [1, 1]} : vector<6x32xf32> to vector<1x32xf32>
    %12 = vector.shape_cast %3 : vector<1x8x32xf32> to vector<8x32xf32>
    %13 = arith.truncf %12 : vector<8x32xf32> to vector<8x32xbf16>
    %c0_6 = arith.constant 0 : index
    %c0_7 = arith.constant 0 : index
    %c0_8 = arith.constant 0 : index
    %14 = vector.load %arg3[%c0_6, %c0_7, %c0_8] : memref<1x32x96xbf16, #tpu.memory_space<vmem>>, vector<1x32x96xbf16>
    %15 = vector.shape_cast %14 : vector<1x32x96xbf16> to vector<32x96xbf16>
    %cst = arith.constant dense<0.000000e+00> : vector<8x96xf32>
    %16 = tpu.matmul %13, %15, %cst {dimension_numbers = #tpu.dot_dimension_numbers<[1], [0], [0], [1], [0, 0, 1, 1], [], []>} : vector<8x32xbf16>, vector<32x96xbf16>, vector<8x96xf32> -> vector<8x96xf32>
    %c0_9 = arith.constant 0 : index
    %c0_10 = arith.constant 0 : index
    %c0_11 = arith.constant 0 : index
    %17 = vector.load %arg7[%c0_9, %c0_10, %c0_11] : memref<1x1x96xf32, #tpu.memory_space<vmem>>, vector<1x1x96xf32>
    %18 = vector.shape_cast %17 : vector<1x1x96xf32> to vector<1x96xf32>
    %19 = vector.broadcast %18 : vector<1x96xf32> to vector<8x96xf32>
    %20 = arith.addf %16, %19 : vector<8x96xf32>
    %21 = vector.extract_strided_slice %20 {offsets = [0, 0], sizes = [8, 32], strides = [1, 1]} : vector<8x96xf32> to vector<8x32xf32>
    %22 = vector.shape_cast %21 : vector<8x32xf32> to vector<1x8x4x8xf32>
    %23 = tpu.transpose %22, [0, 2, 1, 3] : vector<1x8x4x8xf32> -> vector<1x4x8x8xf32>
    %24 = vector.shape_cast %23 : vector<1x4x8x8xf32> to vector<4x8x8xf32>
    %25 = vector.extract_strided_slice %20 {offsets = [0, 32], sizes = [8, 32], strides = [1, 1]} : vector<8x96xf32> to vector<8x32xf32>
    %26 = vector.shape_cast %25 : vector<8x32xf32> to vector<1x8x4x8xf32>
    %27 = tpu.transpose %26, [0, 2, 1, 3] : vector<1x8x4x8xf32> -> vector<1x4x8x8xf32>
    %28 = vector.shape_cast %27 : vector<1x4x8x8xf32> to vector<4x8x8xf32>
    %29 = vector.extract_strided_slice %20 {offsets = [0, 64], sizes = [8, 32], strides = [1, 1]} : vector<8x96xf32> to vector<8x32xf32>
    %30 = vector.shape_cast %29 : vector<8x32xf32> to vector<1x8x4x8xf32>
    %31 = tpu.transpose %30, [0, 2, 1, 3] : vector<1x8x4x8xf32> -> vector<1x4x8x8xf32>
    %32 = vector.shape_cast %31 : vector<1x4x8x8xf32> to vector<4x8x8xf32>
    %33 = arith.truncf %24 : vector<4x8x8xf32> to vector<4x8x8xbf16>
    %34 = arith.truncf %28 : vector<4x8x8xf32> to vector<4x8x8xbf16>
    "tpu.trace_start"() <{level = 10 : i32, message = "nqd,nkd->nqk"}> : () -> ()
    %cst_12 = arith.constant dense<0.000000e+00> : vector<4x8x8xf32>
    %35 = tpu.matmul %33, %34, %cst_12 {dimension_numbers = #tpu.dot_dimension_numbers<[2], [2], [1], [1], [0, 0, 0, 1, 1, 1], [0], [0]>} : vector<4x8x8xbf16>, vector<4x8x8xbf16>, vector<4x8x8xf32> -> vector<4x8x8xf32>
    "tpu.trace_stop"() : () -> ()
    %cst_13 = arith.constant dense<0xFF800000> : vector<4x8xf32>
    %36 = vector.multi_reduction <maximumf>, %35, %cst_13 [2] : vector<4x8x8xf32> to vector<4x8xf32>
    %37 = vector.shape_cast %36 : vector<4x8xf32> to vector<4x8x1xf32>
    %38 = vector.broadcast %37 : vector<4x8x1xf32> to vector<4x8x8xf32>
    %39 = arith.subf %35, %38 : vector<4x8x8xf32>
    %40 = math.exp %39 : vector<4x8x8xf32>
    %cst_14 = arith.constant dense<0.000000e+00> : vector<4x8xf32>
    %41 = vector.multi_reduction <add>, %40, %cst_14 [2] : vector<4x8x8xf32> to vector<4x8xf32>
    %42 = vector.shape_cast %41 : vector<4x8xf32> to vector<4x8x1xf32>
    %43 = arith.truncf %40 : vector<4x8x8xf32> to vector<4x8x8xbf16>
    %44 = arith.truncf %32 : vector<4x8x8xf32> to vector<4x8x8xbf16>
    "tpu.trace_start"() <{level = 10 : i32, message = "nqk,nkd->nqd"}> : () -> ()
    %cst_15 = arith.constant dense<0.000000e+00> : vector<4x8x8xf32>
    %45 = tpu.matmul %43, %44, %cst_15 {dimension_numbers = #tpu.dot_dimension_numbers<[2], [1], [1], [2], [0, 0, 0, 1, 1, 2], [0], [0]>} : vector<4x8x8xbf16>, vector<4x8x8xbf16>, vector<4x8x8xf32> -> vector<4x8x8xf32>
    "tpu.trace_stop"() : () -> ()
    %46 = tpu.reciprocal %42 {approx = true} : vector<4x8x1xf32> -> vector<4x8x1xf32>
    %47 = vector.broadcast %46 : vector<4x8x1xf32> to vector<4x8x8xf32>
    %48 = arith.mulf %45, %47 : vector<4x8x8xf32>
    %49 = vector.shape_cast %48 : vector<4x8x8xf32> to vector<1x4x8x8xf32>
    %50 = tpu.transpose %49, [0, 2, 1, 3] : vector<1x4x8x8xf32> -> vector<1x8x4x8xf32>
    %51 = vector.shape_cast %50 : vector<1x8x4x8xf32> to vector<8x32xf32>
    %52 = arith.truncf %51 : vector<8x32xf32> to vector<8x32xbf16>
    %c0_16 = arith.constant 0 : index
    %c0_17 = arith.constant 0 : index
    %c0_18 = arith.constant 0 : index
    %53 = vector.load %arg4[%c0_16, %c0_17, %c0_18] : memref<1x32x32xbf16, #tpu.memory_space<vmem>>, vector<1x32x32xbf16>
    %54 = vector.shape_cast %53 : vector<1x32x32xbf16> to vector<32x32xbf16>
    %cst_19 = arith.constant dense<0.000000e+00> : vector<8x32xf32>
    %55 = tpu.matmul %52, %54, %cst_19 {dimension_numbers = #tpu.dot_dimension_numbers<[1], [0], [0], [1], [0, 0, 1, 1], [], []>} : vector<8x32xbf16>, vector<32x32xbf16>, vector<8x32xf32> -> vector<8x32xf32>
    %56 = vector.broadcast %6 : vector<1x32xf32> to vector<8x32xf32>
    %57 = arith.addf %55, %56 : vector<8x32xf32>
    %58 = arith.addf %12, %57 : vector<8x32xf32>
    %cst_20 = arith.constant dense<0.000000e+00> : vector<8xf32>
    %59 = vector.multi_reduction <add>, %58, %cst_20 [1] : vector<8x32xf32> to vector<8xf32>
    %60 = vector.shape_cast %59 : vector<8xf32> to vector<8x1xf32>
    %cst_21 = arith.constant 3.200000e+01 : f32
    %61 = vector.broadcast %cst_21 : f32 to vector<8x1xf32>
    %62 = arith.divf %60, %61 : vector<8x1xf32>
    %63 = vector.broadcast %62 : vector<8x1xf32> to vector<8x32xf32>
    %64 = arith.subf %58, %63 : vector<8x32xf32>
    %65 = arith.mulf %64, %64 : vector<8x32xf32>
    %cst_22 = arith.constant dense<0.000000e+00> : vector<8xf32>
    %66 = vector.multi_reduction <add>, %65, %cst_22 [1] : vector<8x32xf32> to vector<8xf32>
    %67 = vector.shape_cast %66 : vector<8xf32> to vector<8x1xf32>
    %cst_23 = arith.constant 3.200000e+01 : f32
    %68 = vector.broadcast %cst_23 : f32 to vector<8x1xf32>
    %69 = arith.divf %67, %68 : vector<8x1xf32>
    %70 = vector.broadcast %62 : vector<8x1xf32> to vector<8x32xf32>
    %71 = arith.subf %58, %70 : vector<8x32xf32>
    %cst_24 = arith.constant 9.99999974E-6 : f32
    %72 = vector.broadcast %cst_24 : f32 to vector<8x1xf32>
    %73 = arith.addf %69, %72 : vector<8x1xf32>
    %74 = math.rsqrt %73 : vector<8x1xf32>
    %75 = vector.broadcast %74 : vector<8x1xf32> to vector<8x32xf32>
    %76 = arith.mulf %71, %75 : vector<8x32xf32>
    %77 = vector.broadcast %7 : vector<1x32xf32> to vector<8x32xf32>
    %78 = arith.mulf %76, %77 : vector<8x32xf32>
    %79 = vector.broadcast %8 : vector<1x32xf32> to vector<8x32xf32>
    %80 = arith.addf %78, %79 : vector<8x32xf32>
    %81 = arith.truncf %80 : vector<8x32xf32> to vector<8x32xbf16>
    %c0_25 = arith.constant 0 : index
    %c0_26 = arith.constant 0 : index
    %c0_27 = arith.constant 0 : index
    %82 = vector.load %arg5[%c0_25, %c0_26, %c0_27] : memref<1x32x2048xbf16, #tpu.memory_space<vmem>>, vector<1x32x2048xbf16>
    %83 = vector.shape_cast %82 : vector<1x32x2048xbf16> to vector<32x2048xbf16>
    %cst_28 = arith.constant dense<0.000000e+00> : vector<8x2048xf32>
    %84 = tpu.matmul %81, %83, %cst_28 {dimension_numbers = #tpu.dot_dimension_numbers<[1], [0], [0], [1], [0, 0, 1, 1], [], []>} : vector<8x32xbf16>, vector<32x2048xbf16>, vector<8x2048xf32> -> vector<8x2048xf32>
    %c0_29 = arith.constant 0 : index
    %c0_30 = arith.constant 0 : index
    %c0_31 = arith.constant 0 : index
    %85 = vector.load %arg8[%c0_29, %c0_30, %c0_31] : memref<1x1x2048xf32, #tpu.memory_space<vmem>>, vector<1x1x2048xf32>
    %86 = vector.shape_cast %85 : vector<1x1x2048xf32> to vector<1x2048xf32>
    %87 = vector.broadcast %86 : vector<1x2048xf32> to vector<8x2048xf32>
    %88 = arith.addf %84, %87 : vector<8x2048xf32>
    %cst_32 = arith.constant 0.000000e+00 : f32
    %89 = vector.broadcast %cst_32 : f32 to vector<8x2048xf32>
    %90 = arith.maximumf %88, %89 : vector<8x2048xf32>
    %91 = arith.truncf %90 : vector<8x2048xf32> to vector<8x2048xbf16>
    %c0_33 = arith.constant 0 : index
    %c0_34 = arith.constant 0 : index
    %c0_35 = arith.constant 0 : index
    %92 = vector.load %arg6[%c0_33, %c0_34, %c0_35] : memref<1x2048x32xbf16, #tpu.memory_space<vmem>>, vector<1x2048x32xbf16>
    %93 = vector.shape_cast %92 : vector<1x2048x32xbf16> to vector<2048x32xbf16>
    %cst_36 = arith.constant dense<0.000000e+00> : vector<8x32xf32>
    %94 = tpu.matmul %91, %93, %cst_36 {dimension_numbers = #tpu.dot_dimension_numbers<[1], [0], [0], [1], [0, 0, 1, 1], [], []>} : vector<8x2048xbf16>, vector<2048x32xbf16>, vector<8x32xf32> -> vector<8x32xf32>
    %95 = vector.broadcast %9 : vector<1x32xf32> to vector<8x32xf32>
    %96 = arith.addf %94, %95 : vector<8x32xf32>
    %97 = arith.addf %80, %96 : vector<8x32xf32>
    %cst_37 = arith.constant dense<0.000000e+00> : vector<8xf32>
    %98 = vector.multi_reduction <add>, %97, %cst_37 [1] : vector<8x32xf32> to vector<8xf32>
    %99 = vector.shape_cast %98 : vector<8xf32> to vector<8x1xf32>
    %cst_38 = arith.constant 3.200000e+01 : f32
    %100 = vector.broadcast %cst_38 : f32 to vector<8x1xf32>
    %101 = arith.divf %99, %100 : vector<8x1xf32>
    %102 = vector.broadcast %101 : vector<8x1xf32> to vector<8x32xf32>
    %103 = arith.subf %97, %102 : vector<8x32xf32>
    %104 = arith.mulf %103, %103 : vector<8x32xf32>
    %cst_39 = arith.constant dense<0.000000e+00> : vector<8xf32>
    %105 = vector.multi_reduction <add>, %104, %cst_39 [1] : vector<8x32xf32> to vector<8xf32>
    %106 = vector.shape_cast %105 : vector<8xf32> to vector<8x1xf32>
    %cst_40 = arith.constant 3.200000e+01 : f32
    %107 = vector.broadcast %cst_40 : f32 to vector<8x1xf32>
    %108 = arith.divf %106, %107 : vector<8x1xf32>
    %109 = vector.broadcast %101 : vector<8x1xf32> to vector<8x32xf32>
    %110 = arith.subf %97, %109 : vector<8x32xf32>
    %cst_41 = arith.constant 9.99999974E-6 : f32
    %111 = vector.broadcast %cst_41 : f32 to vector<8x1xf32>
    %112 = arith.addf %108, %111 : vector<8x1xf32>
    %113 = math.rsqrt %112 : vector<8x1xf32>
    %114 = vector.broadcast %113 : vector<8x1xf32> to vector<8x32xf32>
    %115 = arith.mulf %110, %114 : vector<8x32xf32>
    %116 = vector.broadcast %10 : vector<1x32xf32> to vector<8x32xf32>
    %117 = arith.mulf %115, %116 : vector<8x32xf32>
    %118 = vector.broadcast %11 : vector<1x32xf32> to vector<8x32xf32>
    %119 = arith.addf %117, %118 : vector<8x32xf32>
    %120 = vector.shape_cast %119 : vector<8x32xf32> to vector<1x8x32xf32>
    %c0_42 = arith.constant 0 : index
    %c0_43 = arith.constant 0 : index
    %c0_44 = arith.constant 0 : index
    %121 = vector.load %arg10[%c0_42, %c0_43, %c0_44] : memref<1x8x32xf32, #tpu.memory_space<vmem>>, vector<1x8x32xf32>
    tpu.vector_store %arg10[%c0_42, %c0_43, %c0_44], %120 {strides = array<i32>} : memref<1x8x32xf32, #tpu.memory_space<vmem>>, vector<1x8x32xf32>,
    return
  }
  func.func @transform_0(%arg0: i32, %arg1: i32) -> (i32, i32, i32) {
    %c0_i32 = arith.constant 0 : i32
    %c0_i32_0 = arith.constant 0 : i32
    %c0_i32_1 = arith.constant 0 : i32
    return %arg0, %c0_i32, %c0_i32_0 : i32, i32, i32
  }
  func.func @transform_1(%arg0: i32, %arg1: i32) -> (i32, i32, i32) {
    %c0_i32 = arith.constant 0 : i32
    %c0_i32_0 = arith.constant 0 : i32
    %c0_i32_1 = arith.constant 0 : i32
    return %arg1, %c0_i32, %c0_i32_0 : i32, i32, i32
  }
  func.func @transform_2(%arg0: i32, %arg1: i32) -> (i32, i32, i32) {
    %c0_i32 = arith.constant 0 : i32
    %c0_i32_0 = arith.constant 0 : i32
    %c0_i32_1 = arith.constant 0 : i32
    return %arg1, %c0_i32, %c0_i32_0 : i32, i32, i32
  }
  func.func @transform_3(%arg0: i32, %arg1: i32) -> (i32, i32, i32) {
    %c0_i32 = arith.constant 0 : i32
    %c0_i32_0 = arith.constant 0 : i32
    %c0_i32_1 = arith.constant 0 : i32
    return %arg1, %c0_i32, %c0_i32_0 : i32, i32, i32
  }
  func.func @transform_4(%arg0: i32, %arg1: i32) -> (i32, i32, i32) {
    %c0_i32 = arith.constant 0 : i32
    %c0_i32_0 = arith.constant 0 : i32
    %c0_i32_1 = arith.constant 0 : i32
    return %arg1, %c0_i32, %c0_i32_0 : i32, i32, i32
  }
  func.func @transform_5(%arg0: i32, %arg1: i32) -> (i32, i32, i32) {
    %c0_i32 = arith.constant 0 : i32
    %c0_i32_0 = arith.constant 0 : i32
    %c0_i32_1 = arith.constant 0 : i32
    return %arg1, %c0_i32, %c0_i32_0 : i32, i32, i32
  }
  func.func @transform_6(%arg0: i32, %arg1: i32) -> (i32, i32, i32) {
    %c0_i32 = arith.constant 0 : i32
    %c0_i32_0 = arith.constant 0 : i32
    %c0_i32_1 = arith.constant 0 : i32
    return %arg1, %c0_i32, %c0_i32_0 : i32, i32, i32
  }
  func.func @transform_7(%arg0: i32, %arg1: i32) -> (i32, i32, i32) {
    %c0_i32 = arith.constant 0 : i32
    %c0_i32_0 = arith.constant 0 : i32
    %c0_i32_1 = arith.constant 0 : i32
    return %arg1, %c0_i32, %c0_i32_0 : i32, i32, i32
  }
  func.func @transform_8(%arg0: i32, %arg1: i32) -> (i32, i32, i32) {
    %c0_i32 = arith.constant 0 : i32
    %c0_i32_0 = arith.constant 0 : i32
    %c0_i32_1 = arith.constant 0 : i32
    return %arg0, %c0_i32, %c0_i32_0 : i32, i32, i32
  }
}

</mosaic_0001>

<bundles_post_ra>
// kernel: transformer_forward.3
= control target key start
LH: loop header
LB: loop body
LE: loop exit
PB: predicated region body
PF: predicated region fallthrough
CT: control target
= control target key end

     0   :  { %8 = vsyncpa [#allocation3], 0  ;;  %s351_s0 = inlined_call_operand.hbm [shape: f32[16,32], index: 0, kind: input, shape index: {}]   ;;  %s352_s1 = inlined_call_operand.hbm [shape: bf16[32,128], index: 1, kind: input, shape index: {}]   ;;  %s353_s2 = inlined_call_operand.hbm [shape: f32[1,128], index: 2, kind: input, shape index: {}]   ;;  %s354_s3 = inlined_call_operand.hbm [shape: f32[16,128], index: 3, kind: output, shape index: {}]  }
   0x1   :  { %9 = vsyncpa [#allocation6], 0 }
   0x2   :  { %10 = vsyncpa [#allocation4], 0  ;;  %s267_s12 = smov [#allocation5]   ;;  %s173_s16 = scalar_lea.hbm %s352_s1, 256 }
   0x3   :  { %s28_s13 = sshll.u32 %s267_s12, 4  ;;  %p174_p0 = scmp.ne.s32.totalorder %s352_s1, %s173_s16  ;;  %s29_s13 = int_to_ptr.vmem [resolvable:$true] %s28_s13 }
   0x4   :  { %p177_p1 = scmp.lt.u32.totalorder %s173_s16, %s352_s1 }
   0x6   :  { %p179_p2 = pnand %p177_p1, %p174_p0 }
   0x8   :  { %182 = shalt.err (!%p179_p2)
}
   0x9   :  { %s183_s21 = scalar_lea.vmem %s29_s13, 256  ;;  %p188_p4 = scmp.lt.s32.totalorder %s29_s13, %s29_s13 }
   0xa   :  { %p184_p3 = scmp.ne.s32.totalorder %s29_s13, %s183_s21  ;;  %p189_p5 = scmp.lt.s32.totalorder %s183_s21, %s183_s21 }
   0xc   :  { %p190_p6 = por %p189_p5, %p188_p4 }
   0xe   :  { %p191_p7 = pnand %p190_p6, %p184_p3 }
  0x10   :  { %194 = shalt.err (!%p191_p7)
}
  0x11   :  { %s268_s22 = smov 64   ;;  %s269_s23 = smov 4  }
  0x12   :  { %34 = dma.hbm_to_vmem [thread:$0]  %s352_s1, 256, %s29_s13, [#allocation6], %s268_s22, %s268_s22, %s269_s23  }
  0x13   :  { %s270_s26 = smov [#allocation2]   ;;  %s195_s30 = scalar_lea.hbm %s351_s0, 256 }
  0x14   :  { %s16_s27 = sshll.u32 %s270_s26, 4  ;;  %p196_p8 = scmp.ne.s32.totalorder %s351_s0, %s195_s30  ;;  %s17_s27 = int_to_ptr.vmem [resolvable:$true] %s16_s27 }
  0x15   :  { %p199_p9 = scmp.lt.u32.totalorder %s195_s30, %s351_s0 }
  0x17   :  { %p201_p10 = pnand %p199_p9, %p196_p8 }
  0x19   :  { %204 = shalt.err (!%p201_p10)
}
  0x1a   :  { %s205_s8 = scalar_lea.vmem %s17_s27, 256  ;;  %p210_p12 = scmp.lt.s32.totalorder %s17_s27, %s17_s27 }
  0x1b   :  { %p206_p11 = scmp.ne.s32.totalorder %s17_s27, %s205_s8  ;;  %p211_p13 = scmp.lt.s32.totalorder %s205_s8, %s205_s8 }
  0x1d   :  { %p212_p0 = por %p211_p13, %p210_p12 }
  0x1f   :  { %p213_p1 = pnand %p212_p0, %p206_p11 }
  0x21   :  { %216 = shalt.err (!%p213_p1)
}
  0x22   :  { %s271_s1 = smov 128   ;;  %s272_s9 = smov 8  }
  0x23   :  { %22 = dma.hbm_to_vmem [thread:$0]  %s351_s0, 256, %s17_s27, [#allocation3], %s271_s1, %s271_s1, %s272_s9  }
  0x24   :  { %s273_s12 = smov [#allocation7]   ;;  %s217_s16 = scalar_lea.hbm %s353_s2, 16 }
  0x25   :  { %s41_s13 = sshll.u32 %s273_s12, 4  ;;  %p218_p2 = scmp.ne.s32.totalorder %s353_s2, %s217_s16  ;;  %s42_s13 = int_to_ptr.vmem [resolvable:$true] %s41_s13 }
  0x26   :  { %p221_p3 = scmp.lt.u32.totalorder %s217_s16, %s353_s2 }
  0x28   :  { %p223_p4 = pnand %p221_p3, %p218_p2 }
  0x2a   :  { %226 = shalt.err (!%p223_p4)
}
  0x2b   :  { %s227_s21 = scalar_lea.vmem %s42_s13, 16  ;;  %s231_s0 = scalar_lea.vmem %s42_s13, 32 }
  0x2c   :  { %p228_p5 = scmp.ne.s32.totalorder %s42_s13, %s227_s21  ;;  %p232_p6 = scmp.lt.s32.totalorder %s42_s13, %s42_s13 }
  0x2d   :  { %p233_p7 = scmp.lt.s32.totalorder %s231_s0, %s227_s21 }
  0x2f   :  { %p234_p8 = por %p233_p7, %p232_p6 }
  0x31   :  { %p235_p9 = pnand %p234_p8, %p228_p5 }
  0x33   :  { %238 = shalt.err (!%p235_p9)
}
  0x34   :  { %44 = dma.hbm_to_vmem [thread:$0]  %s353_s2, 16, %s42_s13, [#allocation6]  }
  0x35   :  { %261 = dma.done.wait [#allocation3], 256  }
  0x36   :  { %262 = vsyncadd [#allocation3], 4294967040 }
  0x37   :  { %263 = dma.done.wait [#allocation6], 272  }
  0x38   :  { %264 = vsyncadd [#allocation6], 4294967024  ;;  %v274_v0 = vmov 0.0   ;;  %vm275_vm0 = vmmov 0   ;;  %v171_v1 = vld [vmem:[#allocation5] sm:$0xff]   ;;  %v172_v2 = vld [vmem:[#allocation5 + $0x8] sm:$0xff]  }
  0x39   :  { %153 = vmatprep.subr.bf16.mxu0 %v274_v0  ;;  %157 = vmatprep.mubr.msk.bf16.mxu0 %vm275_vm0, %v274_v0  ;;  %v55_v3 = vld [vmem:[#allocation2] sm:$0xff]  ;;  %v56_v4 = vld [vmem:[#allocation2 + $0x8] sm:$0xff]  ;;  %vm81_vm1 = vcmask 261120   ;;  %s276_s2 = smov [#allocation8]  }
  0x3a   :  { %154 = vmatpush3.bf16.msra.mxu0 %v171_v1  ;;  %v57_v5 = vpack.c.bf16 %v56_v4, %v55_v3  ;;  %v146_v6 = vld [vmem:[#allocation7] ss:$0 sm:$0xff]  ;;  %s133_s24 = sshll.u32 %s276_s2, 4  ;;  %s134_s24 = int_to_ptr.vmem [resolvable:$true] %s133_s24 }
  0x3b   :  { %155 = vmatprep.subr.bf16.mxu0 %v274_v0  ;;  %s239_s25 = scalar_lea.vmem %s134_s24, 256  ;;  %p244_p11 = scmp.lt.s32.totalorder %s134_s24, %s134_s24 }
  0x3c   :  { %p240_p10 = scmp.ne.s32.totalorder %s134_s24, %s239_s25  ;;  %p245_p12 = scmp.lt.s32.totalorder %s239_s25, %s239_s25 }
  0x3e   :  { %156 = vmatpush3.bf16.msra.mxu0 %v172_v2  ;;  %p246_p13 = por %p245_p12, %p244_p11 }
  0x40   :  { %p247_p0 = pnand %p246_p13, %p240_p10 }
  0x41   :  { %158 = vmatmul.mubr.msk.bf16.vlgmr.msra.gmra.mrb[0].mxu0 %vm81_vm1, %v57_v5 }
 0x114   :  { %v119_v7 = vpop.f32.mrb[0].mxu0 }
 0x115   :  { %v120_v8 = vadd.f32 %v146_v6, %v119_v7  ;;  %v159_v9 = vpop.f32.mrb[1].mxu0 }
 0x116   :  { %v122_v10 = vpop.f32.mrb[2].mxu0 }
 0x117   :  { %126 = vst [vmem:[#allocation8] sm:$0xff] %v120_v8  ;;  %v123_v11 = vadd.f32 %v146_v6, %v122_v10  ;;  %v160_v12 = vpop.f32.mrb[3].mxu0 }
 0x119   :  { %127 = vst [vmem:[#allocation8 + $0x8] sm:$0xff] %v123_v11 }
 0x11a   :  { %250 = shalt.err (!%p247_p0)
}
 0x11b   :  { %s251_s28 = scalar_lea.hbm %s354_s3, 256 }
 0x11c   :  { %p252_p1 = scmp.ne.s32.totalorder %s354_s3, %s251_s28  ;;  %p255_p2 = scmp.lt.u32.totalorder %s251_s28, %s354_s3 }
 0x11e   :  { %p257_p3 = pnand %p255_p2, %p252_p1 }
 0x120   :  { %260 = shalt.err (!%p257_p3)
}
 0x121   :  { %139 = dma.vmem_to_hbm [thread:$0]  %s134_s24, 256, %s354_s3, [#allocation4], %s271_s1, %s271_s1, %s272_s9  }
 0x122   :  { %265 = dma.done.wait [#allocation4], 256  }
 0x123   :  { %266 = vsyncadd [#allocation4], 4294967040 }
 0x124   :  { %143 = vsyncpa [#allocation3], 1 }
 0x125   :  { %144 = vsyncpa [#allocation6], 1 }
 0x126   :  { %145 = vsyncpa [#allocation4], 1 }

// kernel: transformer_forward.2
= control target key start
LH: loop header
LB: loop body
LE: loop exit
PB: predicated region body
PF: predicated region fallthrough
CT: control target
= control target key end

     0   :  { %s6313_s0 = inlined_call_operand.hbm [shape: f32[2,8,32], index: 0, kind: input, shape index: {}]   ;;  %s6314_s1 = inlined_call_operand.hbm [shape: bf16[2,32,96], index: 1, kind: input, shape index: {}]   ;;  %s6315_s2 = inlined_call_operand.hbm [shape: bf16[2,32,32], index: 2, kind: input, shape index: {}]   ;;  %s6316_s3 = inlined_call_operand.hbm [shape: bf16[2,32,2048], index: 3, kind: input, shape index: {}]   ;;  %s6317_s4 = inlined_call_operand.hbm [shape: bf16[2,2048,32], index: 4, kind: input, shape index: {}]   ;;  %s6318_s5 = inlined_call_operand.hbm [shape: f32[2,1,96], index: 5, kind: input, shape index: {}]   ;;  %s6319_s6 = inlined_call_operand.hbm [shape: f32[2,1,2048], index: 6, kind: input, shape index: {}]   ;;  %s6320_s7 = inlined_call_operand.hbm [shape: f32[2,6,32], index: 7, kind: input, shape index: {}]   ;;  %s6321_s8 = inlined_call_operand.hbm [shape: f32[2,8,32], index: 8, kind: output, shape index: {}]  }
   0x1   :  { %6351 = sst [smem:[#allocation35_spill]] %s6313_s0 }
   0x2   :  { %6352 = sst [smem:[#allocation36_spill]] %s6314_s1 }
   0x3   :  { %6353 = sst [smem:[#allocation37_spill]] %s6315_s2 }
   0x4   :  { %6354 = sst [smem:[#allocation38_spill]] %s6316_s3 }
   0x5   :  { %6355 = sst [smem:[#allocation39_spill]] %s6317_s4 }
   0x6   :  { %6356 = sst [smem:[#allocation40_spill]] %s6318_s5 }
   0x7   :  { %6357 = sst [smem:[#allocation41_spill]] %s6319_s6 }
   0x8   :  { %6358 = sst [smem:[#allocation42_spill]] %s6320_s7 }
   0x9   :  { %6359 = sst [smem:[#allocation43_spill]] %s6321_s8 }
   0xa   :  { %13 = vsyncpa [#allocation3], 0 }
   0xb   :  { %15 = vsyncpa [#allocation3 + $0x1], 0 }
   0xc   :  { %16 = vsyncpa [#allocation6], 0 }
   0xd   :  { %18 = vsyncpa [#allocation6 + $0x1], 0 }
   0xe   :  { %19 = vsyncpa [#allocation9], 0 }
   0xf   :  { %21 = vsyncpa [#allocation9 + $0x1], 0 }
  0x10   :  { %22 = vsyncpa [#allocation12], 0 }
  0x11   :  { %24 = vsyncpa [#allocation12 + $0x1], 0 }
  0x12   :  { %25 = vsyncpa [#allocation15], 0 }
  0x13   :  { %27 = vsyncpa [#allocation15 + $0x1], 0 }
  0x14   :  { %28 = vsyncpa [#allocation4], 0 }
  0x15   :  { %30 = vsyncpa [#allocation4 + $0x1], 0  ;;  %s5295_s27 = smov 0   ;;  %s5297_s28 = smov 0  }
  0x16   :  { %s5299_s29 = smov 0   ;;  %s5301_s30 = smov 0  }
  0x17   :  { %s5303_s9 = smov 0   ;;  %s5305_s10 = smov 0  }
  0x18   :  { %s5307_s11 = smov 0   ;;  %s5309_s12 = smov 0  }
  0x19   :  { %s5311_s13 = smov 0   ;;  %s5313_s14 = smov 0  }
  0x1a   :  { %s5315_s15 = smov 0  }
  0x1b LB: > { %6360 = sst [smem:[#allocation23_spill]] %s5191_s29  ;;  %p6325_p0 = scmp.eq.s32.totalorder %s5223_s15, 0  ;;  %s5223_s15 = sphi %s5315_s15, %s36_s15   ;;  %s5219_s14 = sphi %s5313_s14, %s6426_s14   ;;  %s5215_s13 = sphi %s5311_s13, %s6425_s13   ;;  %s5211_s12 = sphi %s5309_s12, %s6417_s12   ;;  %s5207_s11 = sphi %s5307_s11, %s6424_s11   ;;  %s5203_s10 = sphi %s5305_s10, %s6416_s10   ;;  %s5199_s9 = sphi %s5303_s9, %s6423_s9   ;;  %s5195_s30 = sphi %s5301_s30, %s6422_s30   ;;  %s5191_s29 = sphi %s5299_s29, %s6414_s29   ;;  %s5187_s28 = sphi %s5297_s28, %s6421_s28   ;;  %s5183_s27 = sphi %s5295_s27, %s6420_s27  }
  0x1c   : > { %6361 = sst [smem:[#allocation24_spill]] %s5195_s30  ;;  %p88_p1 = scmp.ne.s32.totalorder %s5191_s29, %s5187_s28 }
  0x1d   : > { %6362 = sst [smem:[#allocation25_spill]] %s5203_s10  ;;  %p6324_p2 = scmp.lt.s32.totalorder %s5223_s15, 4 }
  0x1e   : > { %6363 = sst [smem:[#allocation26_spill]] %s5207_s11  ;;  %p90_p3 = por %p88_p1, %p6325_p0 }
  0x1f   : > { %6364 = sst [smem:[#allocation27_spill]] %s5211_s12  ;;  %s5357_s16 = sand.u32 1, %s5223_s15  }
  0x20   : > { %6365 = sst [smem:[#allocation28_spill]] %s5219_s14  ;;  %s5360_s17 = sand.u32 1, %s5191_s29  }
  0x21   : > { %6366 = sst [smem:[#allocation29_spill]] %s5223_s15  ;;  %s5363_s18 = sshll.u32 %s5360_s17, 4 }
  0x22   : > { %s5366_s19 = sshll.u32 %s5215_s13, 8  ;;  %s6367_s1 = sld [smem:[#allocation36_spill]] }
  0x23   : > { %s322_s23 = scalar_lea.vmem [#allocation5], %s5363_s18  ;;  %p5377_p4 = pnand %p6324_p2, %p90_p3 }
  0x24   : > { %s329_s24 = sshll.u32 %s322_s23, 4  ;;  %s5381_s24 = int_to_ptr.vmem [resolvable:$true] %s329_s24 }
  0x25   : > { %s6368_s25 = scalar_select %p5377_p4, 1, 0 }
  0x26   : > { %p5388_p6 = pneg %p5377_p4 }
  0x28   : > { %s5372_s22 = scalar_lea.hbm %s6367_s1, %s5366_s19  ;;  %s4850_s12 = scalar_lea.hbm %s6367_s1, 512 }
  0x29   : > { %s4845_s8 = scalar_lea.hbm %s5372_s22, 256  ;;  %p4851_p9 = scmp.lt.u32.totalorder %s5372_s22, %s6367_s1 }
  0x2a   : > { %p4846_p5 = scmp.ne.s32.totalorder %s5372_s22, %s4845_s8  ;;  %p4852_p10 = scmp.lt.u32.totalorder %s4850_s12, %s4845_s8 }
  0x2b   : > { %p4854_p12 = scmp.lt.u32.totalorder %s4845_s8, %s5372_s22 }
  0x2c   : > { %p4848_p7 = pnand %p5388_p6, %p4846_p5  ;;  %p4853_p11 = por %p4852_p10, %p4851_p9 }
  0x2e   : > { %p4849_p8 = pneg %p4848_p7  ;;  %p4855_p13 = por %p4854_p12, %p4853_p11 }
  0x30   : > { %p4856_p1 = pnand %p4855_p13, %p4849_p8 }
  0x32   : > { %4859 = shalt.err (!%p4856_p1)
}
  0x33   : > { %s4860_s26 = scalar_lea.vmem %s5381_s24, 256  ;;  %s5225_s21 = smov [#allocation5]  }
  0x34   : > { %p4861_p3 = scmp.ne.s32.totalorder %s5381_s24, %s4860_s26  ;;  %s4865_s23 = sshll.u32 %s5225_s21, 4  ;;  %s4866_s23 = int_to_ptr.vmem [resolvable:$false] %s4865_s23 }
  0x35   : > { %s4867_s7 = scalar_lea.vmem %s4866_s23, 512  ;;  %p4868_p2 = scmp.lt.s32.totalorder %s5381_s24, %s4866_s23 }
  0x36   : > { %p4863_p5 = pnand %p4861_p3, %p5388_p6  ;;  %p4869_p0 = scmp.lt.s32.totalorder %s4867_s7, %s4860_s26 }
  0x38   : > { %p4864_p7 = pneg %p4863_p5  ;;  %p4870_p9 = por %p4869_p0, %p4868_p2 }
  0x3a   : > { %p4871_p10 = pnand %p4870_p9, %p4864_p7 }
  0x3c   : > { %4874 = shalt.err (!%p4871_p10)
}
  0x3d   : > { %s6335_s8 = smov 64   ;;  %s6329_s11 = smov 4  }
  0x3e   : > { %s6370_s12 = scalar_lea.sflag [#allocation6], %s5357_s16  ;;  %p4066_p0 = scmp.ge.s32.totalorder %s5223_s15, 1 }
  0x3f   : > { %4562 = dma.hbm_to_vmem [thread:$0]  (!%p5377_p4), %s5372_s22, 256, %s5381_s24, %s6370_s12, %s6335_s8, %s6335_s8, %s6329_s11  }
  0x40   : > { %p454_p2 = scmp.lt.s32.totalorder %s5223_s15, 5  ;;  %s4054_s26 = sshll.u32 %s5360_s17, 8 }
  0x41   : > { %s4273_s23 = sshll.u32 %s5215_s13, 12  ;;  %s364_s7 = scalar_lea.vmem [#allocation8], %s4054_s26 }
  0x42   : > { %p5419_p8 = pnand %p4066_p0, %p454_p2  ;;  %s371_s1 = sshll.u32 %s364_s7, 4  ;;  %s5429_s1 = int_to_ptr.vmem [resolvable:$true] %s371_s1 }
  0x43   : > { %s6372_s3 = sld [smem:[#allocation38_spill]]  ;;  %s6331_s22 = scalar_lea.sflag [#allocation9], %s5357_s16 }
  0x44   : > { %s6371_s21 = scalar_select %p5419_p8, 1, 0 }
  0x49   : > { %s5427_s2 = scalar_lea.hbm %s6372_s3, %s4273_s23  ;;  %s4880_s7 = scalar_lea.hbm %s6372_s3, 8192 }
  0x4a   : > { %s4875_s24 = scalar_lea.hbm %s5427_s2, 4096  ;;  %p4881_p1 = scmp.lt.u32.totalorder %s5427_s2, %s6372_s3 }
  0x4b   : > { %p4876_p11 = scmp.ne.s32.totalorder %s5427_s2, %s4875_s24  ;;  %p4882_p3 = scmp.lt.u32.totalorder %s4880_s7, %s4875_s24 }
  0x4c   : > { %p4884_p7 = scmp.lt.u32.totalorder %s4875_s24, %s5427_s2 }
  0x4d   : > { %p4878_p12 = pnand %p4876_p11, %p5388_p6  ;;  %p4883_p5 = por %p4882_p3, %p4881_p1 }
  0x4f   : > { %p4879_p13 = pneg %p4878_p12  ;;  %p4885_p9 = por %p4884_p7, %p4883_p5 }
  0x51   : > { %p4886_p10 = pnand %p4885_p9, %p4879_p13 }
  0x53   : > { %4889 = shalt.err (!%p4886_p10)
}
  0x54   : > { %s4890_s6 = scalar_lea.vmem %s5429_s1, 4096  ;;  %s5228_s23 = smov [#allocation8]  }
  0x55   : > { %p4891_p0 = scmp.ne.s32.totalorder %s5429_s1, %s4890_s6  ;;  %s4895_s12 = sshll.u32 %s5228_s23, 4  ;;  %s4896_s12 = int_to_ptr.vmem [resolvable:$false] %s4895_s12 }
  0x56   : > { %s4897_s11 = scalar_lea.vmem %s4896_s12, 8192  ;;  %p4898_p12 = scmp.lt.s32.totalorder %s5429_s1, %s4896_s12 }
  0x57   : > { %p4893_p2 = pnand %p4891_p0, %p5388_p6  ;;  %p4899_p8 = scmp.lt.s32.totalorder %s4897_s11, %s4890_s6 }
  0x59   : > { %p4894_p11 = pneg %p4893_p2  ;;  %p4900_p1 = por %p4899_p8, %p4898_p12 }
  0x5b   : > { %p4901_p3 = pnand %p4900_p1, %p4894_p11 }
  0x5d   : > { %4904 = shalt.err (!%p4901_p3)
}
  0x5e   : > { %s5229_s24 = smov 1024   ;;  %s4060_s26 = sshll.u32 %s5215_s13, 4 }
  0x5f   : > { %4568 = dma.hbm_to_vmem [thread:$0]  (!%p5377_p4), %s5427_s2, 4096, %s5429_s1, %s6331_s22, %s5229_s24, %s5229_s24, %s6335_s8  }
  0x60   : > { %s6373_s5 = sld [smem:[#allocation40_spill]]  ;;  %s405_s23 = scalar_lea.vmem [#allocation11], %s5360_s17 }
  0x61   : > { %s412_s12 = sshll.u32 %s405_s23, 4  ;;  %s6334_s11 = scalar_lea.sflag [#allocation12], %s5357_s16  ;;  %s413_s12 = int_to_ptr.vmem [resolvable:$true] %s412_s12 }
  0x66   : > { %s5460_s6 = scalar_lea.hbm %s6373_s5, %s4060_s26  ;;  %s4910_s24 = scalar_lea.hbm %s6373_s5, 32 }
  0x67   : > { %s4905_s3 = scalar_lea.hbm %s5460_s6, 16  ;;  %p4911_p7 = scmp.lt.u32.totalorder %s5460_s6, %s6373_s5 }
  0x68   : > { %p4906_p8 = scmp.ne.s32.totalorder %s5460_s6, %s4905_s3  ;;  %p4912_p9 = scmp.lt.u32.totalorder %s4910_s24, %s4905_s3 }
  0x69   : > { %p4914_p0 = scmp.lt.u32.totalorder %s4905_s3, %s5460_s6 }
  0x6a   : > { %p4908_p13 = pnand %p4906_p8, %p5388_p6  ;;  %p4913_p10 = por %p4912_p9, %p4911_p7 }
  0x6c   : > { %p4909_p5 = pneg %p4908_p13  ;;  %p4915_p2 = por %p4914_p0, %p4913_p10 }
  0x6e   : > { %p4916_p11 = pnand %p4915_p2, %p4909_p5 }
  0x70   : > { %4919 = shalt.err (!%p4916_p11)
}
  0x71   : > { %s4920_s4 = scalar_lea.vmem %s413_s12, 16  ;;  %s5230_s23 = smov [#allocation11]  }
  0x72   : > { %p4921_p12 = scmp.ne.s32.totalorder %s413_s12, %s4920_s4  ;;  %s4925_s22 = sshll.u32 %s5230_s23, 4  ;;  %s4926_s22 = int_to_ptr.vmem [resolvable:$false] %s4925_s22 }
  0x73   : > { %s4927_s1 = scalar_lea.vmem %s4926_s22, 32  ;;  %p4928_p8 = scmp.lt.s32.totalorder %s413_s12, %s4926_s22 }
  0x74   : > { %p4923_p1 = pnand %p4921_p12, %p5388_p6  ;;  %p4929_p13 = scmp.lt.s32.totalorder %s4927_s1, %s4920_s4 }
  0x76   : > { %p4924_p3 = pneg %p4923_p1  ;;  %p4930_p4 = por %p4929_p13, %p4928_p8 }
  0x78   : > { %p4931_p7 = pnand %p4930_p4, %p4924_p3 }
  0x7a   : > { %4934 = shalt.err (!%p4931_p7)
}
  0x7b   : > { %p6374_p9 = scmp.ne.s32.totalorder %s6368_s25, 0  ;;  %s5484_s3 = sadd.s32 4294967295, %s5223_s15  }
  0x7c   : > { %s4043_s22 = sadd.s32 4294967294, %s5223_s15   ;;  %s45_s2 = sadd.s32 1, %s5215_s13 }
  0x7d   : > { %4574 = dma.hbm_to_vmem [thread:$0]  (!%p6374_p9), %s5460_s6, 16, %s413_s12, %s6334_s11  }
  0x7e   : > { %p46_p4 = scmp.ge.s32.totalorder %s45_s2, 2  ;;  %s48_s24 = sadd.s32 1, %s5219_s14 }
  0x7f   : > { %s55_s7 = sadd.s32 1, %s5203_s10  ;;  %p62_p5 = scmp.ne.s32.totalorder %s5203_s10, %s5199_s9 }
  0x80   : > { %s6428_s2 = smov (%p46_p4, %s45_s2), 0  ;;  %s6430_s24 = smov (!%p46_p4, %s48_s24), %s5219_s14 }
  0x81   : > { %6375 = sst [smem:[#allocation30_spill]] %s6428_s2  ;;  %p6376_p10 = scmp.eq.s32.totalorder %s5223_s15, 0 }
  0x82   : > { %p68_p2 = scmp.ne.s32.totalorder %s5199_s9, %s5195_s30  ;;  %p50_p11 = scmp.ge.s32.totalorder %s6430_s24, 2 }
  0x83   : > { %p5500_p0 = por %p6376_p10, %p62_p5  ;;  %p69_p12 = scmp.eq.s32.totalorder %s5484_s3, 0 }
  0x84   : > { %s78_s12 = ssub.s32 %s5215_s13, %s6428_s2  ;;  %s81_s26 = sadd.s32 1, %s5191_s29 }
  0x85   : > { %s6432_s24 = smov (%p50_p11, %s6430_s24), 0  ;;  %p5515_p1 = por %p69_p12, %p68_p2 }
  0x86   : > { %6378 = sst [smem:[#allocation31_spill]] %s6432_s24  ;;  %p79_p3 = scmp.eq.s32.totalorder %s78_s12, 0 }
  0x87   : > { %s6379_s4 = scalar_select %p5515_p1, 1, 0 }
  0x88   : > { %s52_s23 = ssub.s32 %s5219_s14, %s6432_s24  ;;  %p94_p8 = scmp.ne.s32.totalorder %s5187_s28, %s5183_s27 }
  0x89   : > { %p53_p13 = scmp.eq.s32.totalorder %s52_s23, 0  ;;  %p274_p7 = scmp.eq.s32.totalorder %s5484_s3, 3 }
  0x8a   : > { %s5525_s1 = scalar_select %p79_p3, %s5191_s29, %s81_s26  }
  0x8b   : > { %s5528_s11 = scalar_select %p53_p13, %s5203_s10, %s55_s7  }
  0x8c   : > { %6380 = sst [smem:[#allocation32_spill]] %s5525_s1  ;;  %p5530_p4 = por %p94_p8, %p69_p12 }
  0x8d   : > { %6381 = sst [smem:[#allocation33_spill]] %s5528_s11  ;;  %p5537_p10 = por %p274_p7, %p62_p5 }
  0x8e   : > { %s6382_s8 = scalar_select %p5530_p4, 1, 0 }
  0x8f   : > { %s6383_s5 = scalar_select %p5537_p10, 1, 0 }
  0x90   : > { %p280_p11 = scmp.eq.s32.totalorder %s4043_s22, 3  ;;  %s300_s27 = sand.u32 1, %s5203_s10  }
  0x91   : > { %s4046_s12 = sshll.u32 %s300_s27, 3  ;;  %s4047_s26 = sshll.u32 %s5219_s14, 7 }
  0x92   : > { %p5545_p1 = por %p280_p11, %p68_p2  ;;  %s304_s7 = scalar_lea.vmem [#allocation2], %s4046_s12 }
  0x93   : > { %s311_s24 = sshll.u32 %s304_s7, 4  ;;  %s6386_s0 = sld [smem:[#allocation35_spill]]  ;;  %s5555_s24 = int_to_ptr.vmem [resolvable:$true] %s311_s24 }
  0x94   : > { %s6384_s23 = scalar_select %p5545_p1, 1, 0 }
  0x95   : > { %p6387_p5 = scmp.lt.s32.totalorder %s5223_s15, 4  ;;  %s6389_s7 = sld [smem:[#allocation37_spill]] }
  0x96   : > { %6385 = sst [smem:[#allocation34_spill]] %s6384_s23  ;;  %s343_s2 = scalar_lea.vmem [#allocation7], %s5363_s18 }
  0x97   : > { %p5561_p2 = pnand %p6387_p5, %p5500_p0  ;;  %s301_s10 = scalar_lea.sflag [#allocation3], %s300_s27 }
  0x99   : > { %s5553_s1 = scalar_lea.hbm %s6386_s0, %s4047_s26  ;;  %s350_s26 = sshll.u32 %s343_s2, 4  ;;  %s5572_s26 = int_to_ptr.vmem [resolvable:$true] %s350_s26 }
  0x9a   : > { %s4935_s29 = scalar_lea.hbm %s5553_s1, 128  ;;  %p4937_p3 = pneg %p5561_p2 }
  0x9b   : > { %s5569_s11 = scalar_lea.hbm %s6389_s7, %s5366_s19  ;;  %p4936_p12 = scmp.ne.s32.totalorder %s5553_s1, %s4935_s29 }
  0x9c   : > { %s4940_s14 = scalar_lea.hbm %s6386_s0, 256  ;;  %p4941_p13 = scmp.lt.u32.totalorder %s5553_s1, %s6386_s0 }
  0x9d   : > { %p4938_p0 = pnand %p4937_p3, %p4936_p12  ;;  %p4942_p7 = scmp.lt.u32.totalorder %s4940_s14, %s4935_s29 }
  0x9e   : > { %p4944_p5 = scmp.lt.u32.totalorder %s4935_s29, %s5553_s1 }
  0x9f   : > { %p4939_p8 = pneg %p4938_p0  ;;  %p4943_p11 = por %p4942_p7, %p4941_p13 }
  0xa1   : > { %p4945_p1 = por %p4944_p5, %p4943_p11 }
  0xa3   : > { %p4946_p10 = pnand %p4945_p1, %p4939_p8 }
  0xa5   : > { %4949 = shalt.err (!%p4946_p10)
}
  0xa6   : > { %s4950_s27 = scalar_lea.vmem %s5555_s24, 128  ;;  %s5231_s23 = smov [#allocation2]  }
  0xa7   : > { %p4951_p12 = scmp.ne.s32.totalorder %s5555_s24, %s4950_s27  ;;  %s4955_s2 = sshll.u32 %s5231_s23, 4  ;;  %s4956_s2 = int_to_ptr.vmem [resolvable:$false] %s4955_s2 }
  0xa8   : > { %s4957_s30 = scalar_lea.vmem %s4956_s2, 256  ;;  %p4958_p9 = scmp.lt.s32.totalorder %s5555_s24, %s4956_s2 }
  0xa9   : > { %p4953_p0 = pnand %p4951_p12, %p4937_p3  ;;  %p4959_p13 = scmp.lt.s32.totalorder %s4957_s30, %s4950_s27 }
  0xab   : > { %p4954_p4 = pneg %p4953_p0  ;;  %p4960_p7 = por %p4959_p13, %p4958_p9 }
  0xad   : > { %p4961_p11 = pnand %p4960_p7, %p4954_p4 }
  0xaf   : > { %4964 = shalt.err (!%p4961_p11)
}
  0xb0   : > { %4559 = dma.hbm_to_vmem [thread:$0]  (!%p5561_p2), %s5553_s1, 128, %s5555_s24, %s301_s10  }
  0xb1   : > { %s4965_s29 = scalar_lea.hbm %s5569_s11, 256  ;;  %s4970_s12 = scalar_lea.hbm %s6389_s7, 512 }
  0xb2   : > { %p4966_p1 = scmp.ne.s32.totalorder %s5569_s11, %s4965_s29  ;;  %p4971_p9 = scmp.lt.u32.totalorder %s5569_s11, %s6389_s7 }
  0xb3   : > { %p4972_p4 = scmp.lt.u32.totalorder %s4970_s12, %s4965_s29  ;;  %p4974_p5 = scmp.lt.u32.totalorder %s4965_s29, %s5569_s11 }
  0xb4   : > { %p4968_p10 = pnand %p4966_p1, %p5388_p6 }
  0xb5   : > { %p4973_p8 = por %p4972_p4, %p4971_p9 }
  0xb6   : > { %p4969_p3 = pneg %p4968_p10 }
  0xb7   : > { %p4975_p12 = por %p4974_p5, %p4973_p8 }
  0xb9   : > { %p4976_p0 = pnand %p4975_p12, %p4969_p3 }
  0xbb   : > { %4979 = shalt.err (!%p4976_p0)
}
  0xbc   : > { %s4980_s10 = scalar_lea.vmem %s5572_s26, 256  ;;  %s5232_s24 = smov [#allocation7]  }
  0xbd   : > { %p4981_p2 = scmp.ne.s32.totalorder %s5572_s26, %s4980_s10  ;;  %s4985_s1 = sshll.u32 %s5232_s24, 4  ;;  %s4986_s1 = int_to_ptr.vmem [resolvable:$false] %s4985_s1 }
  0xbe   : > { %s4987_s22 = scalar_lea.vmem %s4986_s1, 512  ;;  %p4988_p11 = scmp.lt.s32.totalorder %s5572_s26, %s4986_s1 }
  0xbf   : > { %p4983_p13 = pnand %p4981_p2, %p5388_p6  ;;  %p4989_p1 = scmp.lt.s32.totalorder %s4987_s22, %s4980_s10 }
  0xc1   : > { %p4984_p7 = pneg %p4983_p13  ;;  %p4990_p10 = por %p4989_p1, %p4988_p11 }
  0xc3   : > { %p4991_p9 = pnand %p4990_p10, %p4984_p7 }
  0xc5   : > { %4994 = shalt.err (!%p4991_p9)
}
  0xc6   : > { %p6390_p3 = scmp.ne.s32.totalorder %s6368_s25, 0  ;;  %s6391_s2 = smov 4  }
  0xc7   : > { %s6392_s30 = smov 64   ;;  %s6393_s29 = scalar_lea.sflag [#allocation6], %s5357_s16 }
  0xc8   : > { %4565 = dma.hbm_to_vmem [thread:$0]  (!%p6390_p3), %s5569_s11, 256, %s5572_s26, %s6393_s29, %s6392_s30, %s6392_s30, %s6391_s2  }
  0xc9   : > { %s4057_s6 = sshll.u32 %s5360_s17, 10  ;;  %s4274_s14 = sshll.u32 %s5215_s13, 14 }
  0xca   : > { %s6394_s23 = sld [smem:[#allocation39_spill]]  ;;  %s385_s24 = scalar_lea.vmem [#allocation10], %s4057_s6 }
  0xcb   : > { %s392_s1 = sshll.u32 %s385_s24, 4  ;;  %s6395_s7 = sld [smem:[#allocation41_spill]]  ;;  %s5632_s1 = int_to_ptr.vmem [resolvable:$true] %s392_s1 }
  0xd0   : > { %s5630_s10 = scalar_lea.hbm %s6394_s23, %s4274_s14  ;;  %s5000_s14 = scalar_lea.hbm %s6394_s23, 32768 }
  0xd1   : > { %s5638_s15 = scalar_lea.hbm %s6395_s7, %s5366_s19  ;;  %s4995_s11 = scalar_lea.hbm %s5630_s10, 16384 }
  0xd2   : > { %p4996_p4 = scmp.ne.s32.totalorder %s5630_s10, %s4995_s11  ;;  %p5001_p12 = scmp.lt.u32.totalorder %s5630_s10, %s6394_s23 }
  0xd3   : > { %p5002_p0 = scmp.lt.u32.totalorder %s5000_s14, %s4995_s11  ;;  %p5004_p13 = scmp.lt.u32.totalorder %s4995_s11, %s5630_s10 }
  0xd4   : > { %p4998_p8 = pnand %p4996_p4, %p5388_p6 }
  0xd5   : > { %p5003_p2 = por %p5002_p0, %p5001_p12 }
  0xd6   : > { %p4999_p5 = pneg %p4998_p8 }
  0xd7   : > { %p5005_p7 = por %p5004_p13, %p5003_p2 }
  0xd9   : > { %p5006_p11 = pnand %p5005_p7, %p4999_p5 }
  0xdb   : > { %5009 = shalt.err (!%p5006_p11)
}
  0xdc   : > { %s5010_s0 = scalar_lea.vmem %s5632_s1, 16384  ;;  %s5233_s19 = smov [#allocation10]  }
  0xdd   : > { %p5011_p1 = scmp.ne.s32.totalorder %s5632_s1, %s5010_s0  ;;  %s5015_s6 = sshll.u32 %s5233_s19, 4  ;;  %s5016_s6 = int_to_ptr.vmem [resolvable:$false] %s5015_s6 }
  0xde   : > { %s5017_s24 = scalar_lea.vmem %s5016_s6, 32768  ;;  %p5018_p4 = scmp.lt.s32.totalorder %s5632_s1, %s5016_s6 }
  0xdf   : > { %p5013_p10 = pnand %p5011_p1, %p5388_p6  ;;  %p5019_p8 = scmp.lt.s32.totalorder %s5017_s24, %s5010_s0 }
  0xe1   : > { %p5014_p9 = pneg %p5013_p10  ;;  %p5020_p12 = por %p5019_p8, %p5018_p4 }
  0xe3   : > { %p5021_p0 = pnand %p5020_p12, %p5014_p9 }
  0xe5   : > { %5024 = shalt.err (!%p5021_p0)
}
  0xe6   : > { %s6396_s22 = scalar_lea.sflag [#allocation9], %s5357_s16  ;;  %s423_s11 = scalar_lea.vmem [#allocation13], %s5363_s18 }
  0xe7   : > { %4571 = dma.hbm_to_vmem [thread:$0]  (!%p6390_p3), %s5630_s10, 16384, %s5632_s1, %s6396_s22, %s6392_s30, %s6392_s30, %s6391_s2  }
  0xe8   : > { %s431_s26 = sshll.u32 %s423_s11, 4  ;;  %s4064_s29 = sshll.u32 %s5360_s17, 3  ;;  %s432_s26 = int_to_ptr.vmem [resolvable:$true] %s431_s26 }
  0xe9   : > { %s5025_s14 = scalar_lea.hbm %s5638_s15, 256  ;;  %s5030_s0 = scalar_lea.hbm %s6395_s7, 512 }
  0xea   : > { %p5026_p5 = scmp.ne.s32.totalorder %s5638_s15, %s5025_s14  ;;  %p5031_p7 = scmp.lt.u32.totalorder %s5638_s15, %s6395_s7 }
  0xeb   : > { %p5032_p11 = scmp.lt.u32.totalorder %s5030_s0, %s5025_s14  ;;  %p5034_p10 = scmp.lt.u32.totalorder %s5025_s14, %s5638_s15 }
  0xec   : > { %p5028_p2 = pnand %p5026_p5, %p5388_p6 }
  0xed   : > { %p5033_p1 = por %p5032_p11, %p5031_p7 }
  0xee   : > { %p5029_p13 = pneg %p5028_p2 }
  0xef   : > { %p5035_p9 = por %p5034_p10, %p5033_p1 }
  0xf1   : > { %p5036_p4 = pnand %p5035_p9, %p5029_p13 }
  0xf3   : > { %5039 = shalt.err (!%p5036_p4)
}
  0xf4   : > { %s5040_s18 = scalar_lea.vmem %s432_s26, 256  ;;  %s5234_s2 = smov [#allocation13]  }
  0xf5   : > { %p5041_p8 = scmp.ne.s32.totalorder %s432_s26, %s5040_s18  ;;  %s5045_s30 = sshll.u32 %s5234_s2, 4  ;;  %s5046_s30 = int_to_ptr.vmem [resolvable:$false] %s5045_s30 }
  0xf6   : > { %s5047_s10 = scalar_lea.vmem %s5046_s30, 512  ;;  %p5048_p5 = scmp.lt.s32.totalorder %s432_s26, %s5046_s30 }
  0xf7   : > { %p5043_p12 = pnand %p5041_p8, %p5388_p6  ;;  %p5049_p2 = scmp.lt.s32.totalorder %s5047_s10, %s5040_s18 }
  0xf9   : > { %p5044_p0 = pneg %p5043_p12  ;;  %p5050_p3 = por %p5049_p2, %p5048_p5 }
  0xfb   : > { %p5051_p7 = pnand %p5050_p3, %p5044_p0 }
  0xfd   : > { %5054 = shalt.err (!%p5051_p7)
}
  0xfe   : > { %p6397_p11 = scmp.ne.s32.totalorder %s6368_s25, 0  ;;  %s6398_s1 = scalar_lea.sflag [#allocation12], %s5357_s16 }
  0xff   : > { %s4065_s24 = sshll.u32 %s5215_s13, 7  ;;  %s6399_s14 = sld [smem:[#allocation42_spill]] }
 0x100   : > { %4577 = dma.hbm_to_vmem [thread:$0]  (!%p6397_p11), %s5638_s15, 256, %s432_s26, %s6398_s1  }
 0x101   : > { %s442_s27 = scalar_lea.vmem [#allocation14], %s4064_s29  ;;  %s439_s16 = scalar_lea.sflag [#allocation15], %s5360_s17 }
 0x102   : > { %s449_s19 = sshll.u32 %s442_s27, 4  ;;  %s450_s19 = int_to_ptr.vmem [resolvable:$true] %s449_s19 }
 0x105   : > { %s6400_s0 = smov %s6399_s14  ;;  %s5691_s12 = scalar_lea.hbm %s6399_s14, %s4065_s24 }
 0x106   : > { %s5055_s6 = scalar_lea.hbm %s5691_s12, 128  ;;  %s5060_s18 = scalar_lea.hbm %s6400_s0, 256 }
 0x107   : > { %p5056_p3 = scmp.ne.s32.totalorder %s5691_s12, %s5055_s6  ;;  %p5061_p10 = scmp.lt.u32.totalorder %s5691_s12, %s6400_s0 }
 0x108   : > { %p5062_p9 = scmp.lt.u32.totalorder %s5060_s18, %s5055_s6  ;;  %p5064_p8 = scmp.lt.u32.totalorder %s5055_s6, %s5691_s12 }
 0x109   : > { %p5058_p13 = pnand %p5056_p3, %p5388_p6 }
 0x10a   : > { %p5063_p4 = por %p5062_p9, %p5061_p10 }
 0x10b   : > { %p5059_p1 = pneg %p5058_p13 }
 0x10c   : > { %p5065_p12 = por %p5064_p8, %p5063_p4 }
 0x10e   : > { %p5066_p0 = pnand %p5065_p12, %p5059_p1 }
 0x110   : > { %5069 = shalt.err (!%p5066_p0)
}
 0x111   : > { %s5070_s17 = scalar_lea.vmem %s450_s19, 128  ;;  %s5235_s29 = smov [#allocation14]  }
 0x112   : > { %p5071_p5 = scmp.ne.s32.totalorder %s450_s19, %s5070_s17  ;;  %s5075_s10 = sshll.u32 %s5235_s29, 4  ;;  %s5076_s10 = int_to_ptr.vmem [resolvable:$false] %s5075_s10 }
 0x113   : > { %s5077_s1 = scalar_lea.vmem %s5076_s10, 256  ;;  %p5078_p3 = scmp.lt.s32.totalorder %s450_s19, %s5076_s10 }
 0x114   : > { %p5073_p2 = pnand %p5071_p5, %p5388_p6  ;;  %p5079_p13 = scmp.lt.s32.totalorder %s5077_s1, %s5070_s17 }
 0x116   : > { %p5074_p7 = pneg %p5073_p2  ;;  %p5080_p11 = por %p5079_p13, %p5078_p3 }
 0x118   : > { %p5081_p9 = pnand %p5080_p11, %p5074_p7 }
 0x11a   : > { %5084 = shalt.err (!%p5081_p9)
}
 0x11b   : > { %p6401_p10 = scmp.ne.s32.totalorder %s6368_s25, 0  ;;  %p6402_p1 = scmp.ne.s32.totalorder %s6371_s21, 0 }
 0x11c   : > { %s5716_s20 = sand.u32 (!%p6402_p1), 1, %s5199_s9   ;;  %p6403_p6 = scmp.ne.s32.totalorder (!%p6402_p1), %s6379_s4, 0 }
 0x11d   : > { %4580 = dma.hbm_to_vmem [thread:$0]  (!%p6401_p10), %s5691_s12, 128, %s450_s19, %s439_s16  }
 0x11e   : > { %458 = sbr.rel (%p6402_p1) target bundleno = 2983 (0xba7), region = 52  ;;  %s4067_s24 = sshll.u32 (!%p6402_p1), %s5716_s20, 3 }
 0x11f   : > { %s461_s22 = scalar_lea.sflag (!%p6402_p1), [#allocation3], %s5716_s20  ;;  %s5722_s11 = scalar_lea.vmem (!%p6402_p1), [#allocation2], %s4067_s24 }
 0x125   : > { %5158 = dma.done.wait (%p6403_p6), %s461_s22, 128  }
 0x126   : > { %5160 = vsyncadd (%p6403_p6), %s461_s22, 4294967168  ;;  %s469_s25 = sand.u32 1, %s5484_s3   ;;  %s5730_s21 = sand.u32 1, %s5187_s28  }
 0x127   : > { %s5733_s14 = sshll.u32 %s5730_s21, 4  ;;  %s470_s12 = scalar_lea.sflag [#allocation6], %s469_s25 }
 0x128   : > { %s473_s27 = scalar_lea.vmem [#allocation5], %s5733_s14  ;;  %p6404_p11 = scmp.ne.s32.totalorder %s6382_s8, 0 }
 0x12a   : > { %5162 = dma.done.wait (%p6404_p11), %s470_s12, 512  }
 0x12b   : > { %5164 = vsyncadd (%p6404_p11), %s470_s12, 4294966784  ;;  %s4070_s4 = sshll.u32 %s5730_s21, 8  ;;  %s482_s19 = scalar_lea.vmem [#allocation7], %s5733_s14 }
 0x12c   : > { %s488_s16 = scalar_lea.sflag [#allocation9], %s469_s25  ;;  %s5742_s3 = scalar_lea.vmem [#allocation8], %s4070_s4 }
 0x12d   : > { %5166 = dma.done.wait (%p6404_p11), %s488_s16, 20480  }
 0x12e   : > { %5168 = vsyncadd (%p6404_p11), %s488_s16, 4294946816  ;;  %s4071_s6 = sshll.u32 %s5730_s21, 10  ;;  %s506_s26 = scalar_lea.sflag [#allocation12], %s469_s25 }
 0x12f   : > { %s5749_s15 = scalar_lea.vmem [#allocation10], %s4071_s6  ;;  %s508_s18 = scalar_lea.vmem [#allocation11], %s5730_s21 }
 0x130   : > { %5170 = dma.done.wait (%p6404_p11), %s506_s26, 272  }
 0x131   : > { %5172 = vsyncadd (%p6404_p11), %s506_s26, 4294967024  ;;  %s4073_s2 = sshll.u32 %s5730_s21, 3  ;;  %s517_s30 = scalar_lea.vmem [#allocation13], %s5733_s14 }
 0x132   : > { %s523_s17 = scalar_lea.sflag [#allocation15], %s5730_s21  ;;  %s5759_s29 = scalar_lea.vmem [#allocation14], %s4073_s2 }
 0x133   : > { %5174 = dma.done.wait (%p6404_p11), %s523_s17, 128  }
 0x134   : > { %5176 = vsyncadd (%p6404_p11), %s523_s17, 4294967168  ;;  %s5767_s10 = scalar_lea.vmem [#allocation16], %s4067_s24  ;;  %s6405_s1 = sld [smem:[#allocation26_spill]] }
 0x13a   : > { %p4075_p4 = scmp.ne.s32.totalorder %s6405_s1, 0 }
 0x13b   : > { %v598_v0 = vld [vmem:[%s5722_s11] sm:$0xff] (!%p4075_p4)  ;;  %vm599_vm0 = vcmask (!%p4075_p4), 261120  }
 0x13c   : > { %597 = sbr.rel (%p4075_p4) target bundleno = 323 (0x143), region = 88  ;;  %600 = vst.msk [vmem:[%s5767_s10] sm:$0xff] (!%p4075_p4), %vm599_vm0, %v598_v0 }
 0x143 PF: > { %v4691_v1 = vld [vmem:[%s473_s27] sm:$0xff]   ;;  %v5236_v2 = vmov 0.0   ;;  %v4692_v3 = vld [vmem:[%s473_s27 + $0x8] sm:$0xff]   ;;  %vm5237_vm1 = vmmov 0   ;;  %vm627_vm2 = vcmask 261120   ;;  %s5238_s8 = smov 104   ;;  %v686_v17 = vlaneseq }
 0x144   : > { %4474 = vmatprep.subr.bf16.mxu0 %v5236_v2  ;;  %4482 = vmatprep.subr.bf16.mxu1 %v5236_v2  ;;  %v601_v4 = vld [vmem:[%s5767_s10] sm:$0xff]  ;;  %v4076_v6 = vld [vmem:[%s508_s18] ss:$0 sm:$0xff]  ;;  %s5239_s24 = smov 120   ;;  %s5240_s22 = smov 96   ;;  %vm1121_vm3 = vcmask 64512  }
 0x145   : > { %4475 = vmatpush3.bf16.msra.mxu0 %v4691_v1  ;;  %4478 = vmatprep.mubr.msk.bf16.mxu0 %vm5237_vm1, %v5236_v2  ;;  %v603_v5 = vpack.c.bf16 %v601_v4, %v601_v4  ;;  %s5241_s11 = smov 112   ;;  %s5242_s25 = smov 64   ;;  %v5243_v15 = vmov 1983009808   ;;  %v5798_v19 = vshrl.u32 %v686_v17, 7  ;;  %vm1353_vm4 = vcmask 1043456  }
 0x146   : > { %4476 = vmatprep.subr.bf16.mxu0 %v5236_v2  ;;  %4484 = vmatprep.mubr.msk.bf16.mxu1 %vm5237_vm1, %v5236_v2  ;;  %v684_v16 = vunpack.c.l.s4 %v5243_v15  ;;  %v5244_v20 = vmov 1934713408   ;;  %s5245_s21 = smov 16   ;;  %s5246_s12 = smov 8   ;;  %vm1692_vm5 = vcmask 130048   ;;  %vm1694_vm6 = vcmask 195584  }
 0x147   : > { %v716_v21 = vunpack.c.l.s4 %v5244_v20  ;;  %s5247_s27 = smov 24   ;;  %s6406_s14 = sld [smem:[#allocation27_spill]] }
 0x148   : > { %v685_v18 = vunpack.c.0.s8 %v684_v16  ;;  %s6407_s6 = sld [smem:[#allocation43_spill]]  ;;  %s3799_s26 = scalar_lea.sflag [#allocation4], %s5716_s20 }
 0x149   : > { %4477 = vmatpush3.bf16.msra.mxu0 %v4692_v3  ;;  %v717_v27 = vunpack.c.0.s8 %v716_v21  ;;  %p6408_p12 = scmp.ne.s32.totalorder %s6383_s5, 0  ;;  %s5249_s2 = smov [#allocation16]  }
 0x14a   : > { %4488 = vmatprep.subr.bf16.mxu0 %v5236_v2  ;;  %v5803_v24 = vsub.s32 %v685_v18, %v5798_v19 }
 0x14b   : > { %v5812_v34 = vsub.s32 %v717_v27, %v5798_v19 }
 0x14c   : > { %4479 = vmatmul.mubr.msk.bf16.vlgmr.msra.gmra.mrb[0].mxu0 %vm627_vm2, %v603_v5 }
 0x14d   : > { %4490 = vmatprep.mubr.msk.bf16.mxu0 %vm5237_vm1, %v5236_v2  ;;  %s4268_s4 = sshll.u32 %s6406_s14, 7 }
 0x21f   : > { %v665_v7 = vpop.f32.mrb[0].mxu0 }
 0x220   : > { %v666_v8 = vadd.f32 %v4076_v6, %v665_v7  ;;  %v4480_v9 = vpop.f32.mrb[1].mxu0 }
 0x221   : > { %v668_v10 = vpop.f32.mrb[2].mxu0 }
 0x222   : > { %678 = vrot.lane.b32.xlu1 %v666_v8, %s5238_s8  ;;  %672 = vrot.lane.b32.xlu0 %v666_v8, %s5239_s24  ;;  %v4481_v11 = vpop.f32.mrb[3].mxu0 }
 0x226   : > { %817 = vrot.lane.b32.xlu1 %v666_v8, %s5240_s22  ;;  %675 = vrot.lane.b32.xlu0 %v666_v8, %s5241_s11 }
 0x294   : > { %v673_v12 = vpop.permute.xlu0 %672  ;;  %v5790_v13 = vpop.permute.xlu1 %678 }
 0x295   : > { %819 = vrot.lane.b32.xlu0 %v673_v12, %s5240_s22  ;;  %v697_v25 = vcombine.low %v673_v12, %v5790_v13  ;;  %v698_v26 = vcombine.high %v673_v12, %v5790_v13 }
 0x297   : > { %v705_v30 = vrot.slane %v697_v25, %v5803_v24  ;;  %v712_v31 = vrot.slane %v698_v26, %v5803_v24 }
 0x298   : > { %v5792_v14 = vpop.permute.xlu0 %675  ;;  %v818_v32 = vpop.permute.xlu1 %817 }
 0x299   : > { %823 = vrot.lane.b32.xlu0 %v5790_v13, %s5240_s22  ;;  %821 = vrot.lane.b32.xlu1 %v5792_v14, %s5240_s22  ;;  %v681_v22 = vcombine.low %v666_v8, %v5792_v14  ;;  %v682_v23 = vcombine.high %v666_v8, %v5792_v14 }
 0x29b   : > { %v689_v28 = vrot.slane %v681_v22, %v5803_v24  ;;  %v696_v29 = vrot.slane %v682_v23, %v5803_v24 }
 0x29d   : > { %965 = vrot.lane.b32.xlu0 %v666_v8, %s5242_s25  ;;  %967 = vrot.lane.b32.xlu1 %v673_v12, %s5242_s25  ;;  %v713_v35 = vcombine.low %v689_v28, %v705_v30  ;;  %v714_v36 = vcombine.high %v689_v28, %v705_v30  ;;  %v729_v37 = vcombine.low %v696_v29, %v712_v31 }
 0x29e   : > { %v730_v38 = vcombine.high %v696_v29, %v712_v31 }
 0x29f   : > { %v721_v45 = vrot.slane %v713_v35, %v5812_v34  ;;  %v728_v46 = vrot.slane %v714_v36, %v5812_v34  ;;  %v737_v47 = vrot.slane %v729_v37, %v5812_v34 }
 0x2a0   : > { %v744_v48 = vrot.slane %v730_v38, %v5812_v34 }
 0x2a1   : > { %v749_v57 = vcombine.low %v721_v45, %v728_v46  ;;  %v4080_v58 = vcombine.high %v721_v45, %v728_v46 }
 0x2a2   : > { %v765_v59 = vcombine.low %v737_v47, %v744_v48  ;;  %v4081_v60 = vcombine.high %v737_v47, %v744_v48 }
 0x2a3   : > { %v756_v6 = vrot.slane %v749_v57, %v5803_v24  ;;  %v764_v7 = vrot.slane %v4080_v58, %v5803_v24 }
 0x2a4   : > { %v772_v8 = vrot.slane %v765_v59, %v5803_v24  ;;  %v780_v9 = vrot.slane %v4081_v60, %v5803_v24 }
 0x2a5   : > { %v781_v23 = vcombine.low %v756_v6, %v764_v7 }
 0x2a6   : > { %v797_v25 = vcombine.low %v772_v8, %v780_v9 }
 0x307   : > { %v820_v33 = vpop.permute.xlu0 %819 }
 0x30b   : > { %v822_v39 = vpop.permute.xlu1 %821  ;;  %v824_v40 = vpop.permute.xlu0 %823 }
 0x30c   : > { %v829_v41 = vcombine.low %v818_v32, %v822_v39  ;;  %v830_v42 = vcombine.high %v818_v32, %v822_v39  ;;  %v845_v43 = vcombine.low %v820_v33, %v824_v40  ;;  %v846_v44 = vcombine.high %v820_v33, %v824_v40 }
 0x30d   : > { %v789_v32 = vrot.slane %v781_v23, %v5812_v34  ;;  %v805_v33 = vrot.slane %v797_v25, %v5812_v34  ;;  %v782_v39 = vcombine.high %v756_v6, %v764_v7  ;;  %v798_v40 = vcombine.high %v772_v8, %v780_v9 }
 0x30e   : > { %v837_v49 = vrot.slane %v829_v41, %v5803_v24  ;;  %v844_v50 = vrot.slane %v830_v42, %v5803_v24  ;;  %v853_v51 = vrot.slane %v845_v43, %v5803_v24  ;;  %v860_v52 = vrot.slane %v846_v44, %v5803_v24 }
 0x30f   : > { %v813_v41 = vcombine.low %v789_v32, %v805_v33  ;;  %v814_v42 = vcombine.high %v789_v32, %v805_v33  ;;  %v796_v47 = vrot.slane %v782_v39, %v5812_v34  ;;  %v812_v48 = vrot.slane %v798_v40, %v5812_v34 }
 0x310   : > { %v861_v53 = vcombine.low %v837_v49, %v853_v51  ;;  %v862_v54 = vcombine.high %v837_v49, %v853_v51  ;;  %v877_v55 = vcombine.low %v844_v50, %v860_v52  ;;  %v878_v56 = vcombine.high %v844_v50, %v860_v52 }
 0x311   : > { %v1113_v45 = vpack.c.bf16 %v813_v41, %v813_v41  ;;  %v1114_v46 = vpack.c.bf16 %v814_v42, %v814_v42  ;;  %v815_v51 = vcombine.low %v796_v47, %v812_v48  ;;  %v816_v52 = vcombine.high %v796_v47, %v812_v48 }
 0x312   : > { %v869_v61 = vrot.slane %v861_v53, %v5812_v34  ;;  %v876_v62 = vrot.slane %v862_v54, %v5812_v34  ;;  %v885_v63 = vrot.slane %v877_v55, %v5812_v34  ;;  %v892_v0 = vrot.slane %v878_v56, %v5812_v34 }
 0x313   : > { %v1115_v53 = vpack.c.bf16 %v815_v51, %v815_v51  ;;  %v1116_v54 = vpack.c.bf16 %v816_v52, %v816_v52 }
 0x314   : > { %v897_v1 = vcombine.low %v869_v61, %v876_v62  ;;  %v4082_v3 = vcombine.high %v869_v61, %v876_v62  ;;  %v913_v4 = vcombine.low %v885_v63, %v892_v0  ;;  %v4083_v5 = vcombine.high %v885_v63, %v892_v0 }
 0x316   : > { %v904_v10 = vrot.slane %v897_v1, %v5803_v24  ;;  %v912_v11 = vrot.slane %v4082_v3, %v5803_v24  ;;  %v920_v12 = vrot.slane %v913_v4, %v5803_v24  ;;  %v928_v15 = vrot.slane %v4083_v5, %v5803_v24 }
 0x318   : > { %v929_v16 = vcombine.low %v904_v10, %v912_v11  ;;  %v945_v17 = vcombine.low %v920_v12, %v928_v15  ;;  %v930_v18 = vcombine.high %v904_v10, %v912_v11  ;;  %v946_v20 = vcombine.high %v920_v12, %v928_v15  ;;  %v968_v12 = vpop.permute.xlu1 %967  ;;  %v966_v15 = vpop.permute.xlu0 %965 }
 0x31a   : > { %v937_v21 = vrot.slane %v929_v16, %v5812_v34  ;;  %v953_v22 = vrot.slane %v945_v17, %v5812_v34  ;;  %v944_v28 = vrot.slane %v930_v18, %v5812_v34  ;;  %v960_v29 = vrot.slane %v946_v20, %v5812_v34 }
 0x31c   : > { %v961_v26 = vcombine.low %v937_v21, %v953_v22  ;;  %v962_v27 = vcombine.high %v937_v21, %v953_v22  ;;  %v963_v37 = vcombine.low %v944_v28, %v960_v29  ;;  %v964_v38 = vcombine.high %v944_v28, %v960_v29 }
 0x31e   : > { %v1117_v30 = vpack.c.bf16 %v961_v26, %v961_v26  ;;  %v1118_v31 = vpack.c.bf16 %v962_v27, %v962_v27  ;;  %v1119_v43 = vpack.c.bf16 %v963_v37, %v963_v37  ;;  %v1120_v44 = vpack.c.bf16 %v964_v38, %v964_v38 }
 0x320   : > { %v1126_v35 = vsel %vm1121_vm3, %v1117_v30, 0  ;;  %v1172_v36 = vsel %vm1121_vm3, %v1118_v31, 0  ;;  %v1218_v49 = vsel %vm1121_vm3, %v1119_v43, 0  ;;  %v1264_v50 = vsel %vm1121_vm3, %v1120_v44, 0 }
 0x321   : > { %4483 = vmatpush3.bf16.xpose.msra.mxu1 %v1126_v35  ;;  %4489 = vmatpush3.bf16.xpose.msra.mxu0 %v1172_v36 }
 0x322   : > { %4494 = vmatprep.subr.bf16.mxu1 %v5236_v2  ;;  %4500 = vmatprep.subr.bf16.mxu0 %v5236_v2 }
 0x328   : > { %4485 = vmatmul.mubr.msk.bf16.vlgmr.msra.gmra.mrb[0].mxu1 %vm1121_vm3, %v1113_v45  ;;  %4491 = vmatmul.mubr.msk.bf16.vlgmr.msra.gmra.mrb[4].mxu0 %vm1121_vm3, %v1114_v46 }
 0x329   : > { %4495 = vmatpush3.bf16.xpose.msra.mxu1 %v1218_v49  ;;  %4501 = vmatpush3.bf16.xpose.msra.mxu0 %v1264_v50 }
 0x32a   : > { %4496 = vmatprep.mubr.msk.bf16.mxu1 %vm5237_vm1, %v5236_v2  ;;  %4502 = vmatprep.mubr.msk.bf16.mxu0 %vm5237_vm1, %v5236_v2 }
 0x32b   : > { %4506 = vmatprep.subr.bf16.mxu1 %v5236_v2  ;;  %4512 = vmatprep.subr.bf16.mxu0 %v5236_v2 }
 0x330   : > { %4497 = vmatmul.mubr.msk.bf16.vlgmr.msra.gmra.mrb[4].mxu1 %vm1121_vm3, %v1115_v53  ;;  %4503 = vmatmul.mubr.msk.bf16.vlgmr.msra.gmra.mrb[8].mxu0 %vm1121_vm3, %v1116_v54 }
 0x331   : > { %4508 = vmatprep.mubr.msk.bf16.mxu1 %vm5237_vm1, %v5236_v2  ;;  %4514 = vmatprep.mubr.msk.bf16.mxu0 %vm5237_vm1, %v5236_v2 }
 0x3fb   : > { %v1162_v55 = vpop.f32.mrb[0].mxu1  ;;  %v1208_v56 = vpop.f32.mrb[4].mxu0 }
 0x3fc   : > { %v4486_v57 = vpop.f32.mrb[1].mxu1  ;;  %v4492_v58 = vpop.f32.mrb[5].mxu0  ;;  %v1306_v59 = vsel %vm1121_vm3, %v1162_v55, -inf  ;;  %v1309_v60 = vsel %vm1121_vm3, %v1208_v56, -inf }
 0x3fd   : > { %1307 = vmax.xlane.f32.xlu1 %v1306_v59  ;;  %v1165_v61 = vpop.f32.mrb[2].mxu1  ;;  %1310 = vmax.xlane.f32.xlu0 %v1309_v60  ;;  %v1211_v62 = vpop.f32.mrb[6].mxu0 }
 0x3fe   : > { %v4487_v63 = vpop.f32.mrb[3].mxu1  ;;  %v4493_v0 = vpop.f32.mrb[7].mxu0 }
 0x403   : > { %v5864_v1 = vpop.f32.mrb[4].mxu1  ;;  %v5866_v3 = vpop.f32.mrb[8].mxu0 }
 0x404   : > { %v4498_v4 = vpop.f32.mrb[5].mxu1  ;;  %v4504_v5 = vpop.f32.mrb[9].mxu0  ;;  %v1312_v10 = vsel %vm1121_vm3, %v5864_v1, -inf  ;;  %v1315_v11 = vsel %vm1121_vm3, %v5866_v3, -inf }
 0x405   : > { %v1257_v6 = vpop.f32.mrb[6].mxu1  ;;  %v1303_v7 = vpop.f32.mrb[10].mxu0 }
 0x406   : > { %v4499_v8 = vpop.f32.mrb[7].mxu1  ;;  %v4505_v9 = vpop.f32.mrb[11].mxu0 }
 0x40e   : > { %969 = vrot.lane.b32.xlu1 %v5792_v14, %s5242_s25 }
 0x413   : > { %971 = vrot.lane.b32.xlu0 %v5790_v13, %s5242_s25 }
 0x432   : > { %1313 = vmax.xlane.f32.xlu1 %v1312_v10  ;;  %1316 = vmax.xlane.f32.xlu0 %v1315_v11 }
 0x48a   : > { %v1308_v16 = vpop.xlane.xlu1 %1307  ;;  %v1311_v17 = vpop.xlane.xlu0 %1310 }
 0x48b   : > { %v1318_v18 = vsub.f32 %v1162_v55, %v1308_v16  ;;  %v1319_v20 = vsub.f32 %v1208_v56, %v1311_v17 }
 0x48d   : > { %v1322_v21 = vmul.f32 1.442695, %v1318_v18  ;;  %v1324_v22 = vmul.f32 1.442695, %v1319_v20 }
 0x48e   : > { %v970_v14 = vpop.permute.xlu1 %969  ;;  %v972_v23 = vpop.permute.xlu0 %971 }
 0x48f   : > { %4823 = vpow2.f32 %v1322_v21  ;;  %v977_v13 = vcombine.low %v966_v15, %v970_v14  ;;  %v978_v25 = vcombine.high %v966_v15, %v970_v14  ;;  %v993_v26 = vcombine.low %v968_v12, %v972_v23 }
 0x490   : > { %4825 = vpow2.f32 %v1324_v22  ;;  %v994_v27 = vcombine.high %v968_v12, %v972_v23 }
 0x491   : > { %v985_v28 = vrot.slane %v977_v13, %v5803_v24  ;;  %v992_v29 = vrot.slane %v978_v25, %v5803_v24  ;;  %v1001_v30 = vrot.slane %v993_v26, %v5803_v24 }
 0x492   : > { %v1008_v31 = vrot.slane %v994_v27, %v5803_v24 }
 0x493   : > { %v1009_v32 = vcombine.low %v985_v28, %v1001_v30  ;;  %v1010_v33 = vcombine.high %v985_v28, %v1001_v30 }
 0x494   : > { %v1025_v35 = vcombine.low %v992_v29, %v1008_v31  ;;  %v1026_v36 = vcombine.high %v992_v29, %v1008_v31 }
 0x495   : > { %v1017_v37 = vrot.slane %v1009_v32, %v5812_v34  ;;  %v1024_v38 = vrot.slane %v1010_v33, %v5812_v34 }
 0x496   : > { %v1033_v39 = vrot.slane %v1025_v35, %v5812_v34  ;;  %v1040_v40 = vrot.slane %v1026_v36, %v5812_v34 }
 0x497   : > { %v1045_v41 = vcombine.low %v1017_v37, %v1024_v38  ;;  %v4084_v42 = vcombine.high %v1017_v37, %v1024_v38 }
 0x498   : > { %v1061_v43 = vcombine.low %v1033_v39, %v1040_v40  ;;  %v4085_v44 = vcombine.high %v1033_v39, %v1040_v40 }
 0x499   : > { %v4824_v45 = vpop.eup %4823  ;;  %v1052_v46 = vrot.slane %v1045_v41, %v5803_v24  ;;  %v1060_v47 = vrot.slane %v4084_v42, %v5803_v24 }
 0x49a   : > { %v4826_v48 = vpop.eup %4825  ;;  %v1068_v49 = vrot.slane %v1061_v43, %v5803_v24  ;;  %v1076_v50 = vrot.slane %v4085_v44, %v5803_v24  ;;  %v1330_v51 = vsel %vm1121_vm3, %v4824_v45, 0.0  ;;  %v1342_v10 = vpack.c.bf16 %v4824_v45, %v4824_v45 }
 0x49b   : > { %v1333_v52 = vsel %vm1121_vm3, %v4826_v48, 0.0  ;;  %1331 = vadd.xlane.f32.xlu0 %v1330_v51  ;;  %v1077_v53 = vcombine.low %v1052_v46, %v1060_v47  ;;  %v1078_v54 = vcombine.high %v1052_v46, %v1060_v47  ;;  %v1343_v11 = vpack.c.bf16 %v4826_v48, %v4826_v48 }
 0x49c   : > { %1334 = vadd.xlane.f32.xlu1 %v1333_v52  ;;  %v1093_v55 = vcombine.low %v1068_v49, %v1076_v50  ;;  %v1094_v56 = vcombine.high %v1068_v49, %v1076_v50 }
 0x49d   : > { %v1085_v57 = vrot.slane %v1077_v53, %v5812_v34  ;;  %v1092_v58 = vrot.slane %v1078_v54, %v5812_v34 }
 0x49e   : > { %v1101_v59 = vrot.slane %v1093_v55, %v5812_v34  ;;  %v1108_v60 = vrot.slane %v1094_v56, %v5812_v34 }
 0x4a0   : > { %v1109_v61 = vcombine.low %v1085_v57, %v1101_v59  ;;  %v1110_v62 = vcombine.high %v1085_v57, %v1101_v59  ;;  %v1111_v63 = vcombine.low %v1092_v58, %v1108_v60  ;;  %v1112_v0 = vcombine.high %v1092_v58, %v1108_v60 }
 0x4a2   : > { %v1346_v4 = vpack.c.bf16 %v1109_v61, %v1109_v61  ;;  %v1347_v5 = vpack.c.bf16 %v1110_v62, %v1110_v62  ;;  %v1348_v8 = vpack.c.bf16 %v1111_v63, %v1111_v63  ;;  %v1349_v9 = vpack.c.bf16 %v1112_v0, %v1112_v0  ;;  %v4693_v63 = vld [vmem:[%s482_s19] sm:$0xff]  }
 0x4a4   : > { %v1355_v6 = vsel %vm1353_vm4, %v1346_v4, 0  ;;  %v1401_v7 = vsel %vm1353_vm4, %v1347_v5, 0  ;;  %v1447_v12 = vsel %vm1353_vm4, %v1348_v8, 0  ;;  %v1493_v15 = vsel %vm1353_vm4, %v1349_v9, 0 }
 0x4a5   : > { %4507 = vmatpush3.bf16.msra.mxu1 %v1355_v6  ;;  %4513 = vmatpush3.bf16.msra.mxu0 %v1401_v7 }
 0x4a6   : > { %4518 = vmatprep.subr.bf16.mxu1 %v5236_v2  ;;  %4524 = vmatprep.subr.bf16.mxu0 %v5236_v2 }
 0x4a8   : > { %4509 = vmatmul.mubr.msk.bf16.vlgmr.msra.gmra.mrb[8].mxu1 %vm1121_vm3, %v1342_v10  ;;  %4515 = vmatmul.mubr.msk.bf16.vlgmr.msra.gmra.mrb[12].mxu0 %vm1121_vm3, %v1343_v11  ;;  %v4694_v11 = vld [vmem:[%s482_s19 + $0x8] sm:$0xff]   ;;  %s3812_s19 = sshll.u32 %s5767_s10, 4  ;;  %s6250_s19 = int_to_ptr.vmem [resolvable:$true] %s3812_s19 }
 0x4a9   : > { %4519 = vmatpush3.bf16.msra.mxu1 %v1447_v12  ;;  %4525 = vmatpush3.bf16.msra.mxu0 %v1493_v15  ;;  %s5085_s18 = scalar_lea.vmem %s6250_s19, 128 }
 0x4aa   : > { %4520 = vmatprep.mubr.msk.bf16.mxu1 %vm5237_vm1, %v5236_v2  ;;  %4526 = vmatprep.mubr.msk.bf16.mxu0 %vm5237_vm1, %v5236_v2  ;;  %p5086_p8 = scmp.ne.s32.totalorder %s6250_s19, %s5085_s18 }
 0x4ab   : > { %4530 = vmatprep.subr.bf16.mxu1 %v5236_v2 }
 0x4ac   : > { %p5087_p0 = pnand %p5086_p8, %p6408_p12 }
 0x4ae   : > { %p5088_p5 = pneg %p5087_p0 }
 0x4bf   : > { %v1314_v16 = vpop.xlane.xlu1 %1313  ;;  %v1317_v17 = vpop.xlane.xlu0 %1316 }
 0x4c0   : > { %v1320_v18 = vsub.f32 %v5864_v1, %v1314_v16  ;;  %v1321_v20 = vsub.f32 %v5866_v3, %v1317_v17 }
 0x4c2   : > { %v1326_v21 = vmul.f32 1.442695, %v1320_v18  ;;  %v1328_v22 = vmul.f32 1.442695, %v1321_v20 }
 0x4c4   : > { %4827 = vpow2.f32 %v1326_v21 }
 0x4c5   : > { %4829 = vpow2.f32 %v1328_v22 }
 0x4ce   : > { %v4828_v14 = vpop.eup %4827 }
 0x4cf   : > { %v4830_v23 = vpop.eup %4829  ;;  %v1336_v13 = vsel %vm1121_vm3, %v4828_v14, 0.0  ;;  %v1344_v25 = vpack.c.bf16 %v4828_v14, %v4828_v14 }
 0x4d0   : > { %1337 = vadd.xlane.f32.xlu0 %v1336_v13  ;;  %v1339_v26 = vsel %vm1121_vm3, %v4830_v23, 0.0  ;;  %v1345_v27 = vpack.c.bf16 %v4830_v23, %v4830_v23 }
 0x4d1   : > { %1340 = vadd.xlane.f32.xlu1 %v1339_v26  ;;  %4521 = vmatmul.mubr.msk.bf16.vlgmr.msra.gmra.mrb[12].mxu1 %vm1121_vm3, %v1344_v25 }
 0x4d2   : > { %4527 = vmatmul.mubr.msk.bf16.vlgmr.msra.gmra.mrb[16].mxu0 %vm1121_vm3, %v1345_v27  ;;  %4534 = vmatprep.mubr.msk.bf16.mxu1 %vm5237_vm1, %v5236_v2 }
 0x4d3   : > { %4531 = vmatpush3.bf16.msra.mxu1 %v4693_v63  ;;  %v1803_v63 = vld [vmem:[%s5742_s3 + $0x88] sm:$0xff] }
 0x4d4   : > { %4532 = vmatprep.subr.bf16.mxu1 %v5236_v2 }
 0x4d7   : > { %4533 = vmatpush3.bf16.msra.mxu1 %v4694_v11 }
 0x528   : > { %v1332_v35 = vpop.xlane.xlu0 %1331 }
 0x529   : > { %v1335_v36 = vpop.xlane.xlu1 %1334  ;;  %4831 = vrcp.f32 %v1332_v35 }
 0x52a   : > { %4833 = vrcp.f32 %v1335_v36 }
 0x533   : > { %v4832_v39 = vpop.eup %4831 }
 0x534   : > { %v4834_v40 = vpop.eup %4833 }
 0x55d   : > { %v1338_v37 = vpop.xlane.xlu0 %1337 }
 0x55e   : > { %v1341_v38 = vpop.xlane.xlu1 %1340  ;;  %4835 = vrcp.f32 %v1338_v37  ;;  %v5939_v37 = vsub.s32 0, %v5798_v19 }
 0x55f   : > { %4837 = vrcp.f32 %v1341_v38  ;;  %v5942_v38 = vld [vmem:[%s5759_s29] sm:$0x3f] }
 0x568   : > { %v4836_v41 = vpop.eup %4835 }
 0x569   : > { %v4838_v43 = vpop.eup %4837 }
 0x57b   : > { %v1391_v1 = vpop.f32.mrb[8].mxu1  ;;  %v1437_v3 = vpop.f32.mrb[12].mxu0 }
 0x57c   : > { %v4510_v28 = vpop.f32.mrb[9].mxu1  ;;  %v4516_v29 = vpop.f32.mrb[13].mxu0  ;;  %v1539_v44 = vmul.f32 %v4832_v39, %v1391_v1  ;;  %v1540_v48 = vmul.f32 %v4834_v40, %v1437_v3  ;;  %v1704_v39 = vrot.slane %v5942_v38, %v5939_v37 }
 0x57d   : > { %v1394_v30 = vpop.f32.mrb[10].mxu1  ;;  %v1440_v31 = vpop.f32.mrb[14].mxu0 }
 0x57e   : > { %v4511_v32 = vpop.f32.mrb[11].mxu1  ;;  %v4517_v33 = vpop.f32.mrb[15].mxu0 }
 0x5a4   : > { %v1483_v42 = vpop.f32.mrb[12].mxu1 }
 0x5a5   : > { %v1541_v45 = vmul.f32 %v4836_v41, %v1483_v42  ;;  %v1529_v46 = vpop.f32.mrb[16].mxu0  ;;  %v4522_v47 = vpop.f32.mrb[13].mxu1 }
 0x5a6   : > { %v1542_v49 = vmul.f32 %v4838_v43, %v1529_v46  ;;  %v4528_v50 = vpop.f32.mrb[17].mxu0  ;;  %v1486_v51 = vpop.f32.mrb[14].mxu1 }
 0x5a7   : > { %v1543_v52 = vcombine.low %v1539_v44, %v1541_v45  ;;  %v1544_v53 = vcombine.high %v1539_v44, %v1541_v45  ;;  %v1532_v54 = vpop.f32.mrb[18].mxu0  ;;  %v4523_v55 = vpop.f32.mrb[15].mxu1  ;;  %v4843_v45 = vld [vmem:[%s5767_s10] sm:$0xff] }
 0x5a8   : > { %v1559_v56 = vcombine.low %v1540_v48, %v1542_v49  ;;  %v1560_v57 = vcombine.high %v1540_v48, %v1542_v49  ;;  %v4529_v58 = vpop.f32.mrb[19].mxu0  ;;  %v1794_v54 = vld [vmem:[%s5742_s3 + $0x40] sm:$0xff]  ;;  %v1787_v55 = vld [vmem:[%s5742_s3 + $0x8] sm:$0xff] }
 0x5a9   : > { %v1551_v59 = vrot.slane %v1543_v52, %v5803_v24  ;;  %v1558_v60 = vrot.slane %v1544_v53, %v5803_v24  ;;  %v1786_v53 = vld [vmem:[%s5742_s3] sm:$0xff] }
 0x5aa   : > { %v1567_v61 = vrot.slane %v1559_v56, %v5803_v24  ;;  %v1574_v62 = vrot.slane %v1560_v57, %v5803_v24  ;;  %v4100_v56 = vcombine.high %v1786_v53, %v1794_v54  ;;  %v1795_v57 = vld [vmem:[%s5742_s3 + $0x48] sm:$0xff]  ;;  %v4099_v58 = vcombine.low %v1786_v53, %v1794_v54  ;;  %v1801_v53 = vld [vmem:[%s5742_s3 + $0x78] sm:$0xff] }
 0x5ac   : > { %v1575_v0 = vcombine.low %v1551_v59, %v1567_v61  ;;  %v1576_v4 = vcombine.high %v1551_v59, %v1567_v61  ;;  %v1591_v5 = vcombine.low %v1558_v60, %v1574_v62  ;;  %v1592_v6 = vcombine.high %v1558_v60, %v1574_v62  ;;  %2065 = vmatprep.subr.bf16.mxu0 %v4100_v56  ;;  %v1802_v61 = vld [vmem:[%s5742_s3 + $0x80] sm:$0xff] }
 0x5ad   : > { %v4101_v59 = vcombine.low %v1787_v55, %v1795_v57  ;;  %v4102_v60 = vcombine.high %v1787_v55, %v1795_v57  ;;  %2066 = vmatpush1.bf16.msra.mxu0 %v4099_v58  ;;  %v1810_v62 = vld [vmem:[%s5742_s3 + $0xc0] sm:$0xff]  ;;  %v1808_v58 = vld [vmem:[%s5742_s3 + $0xb0] sm:$0xff] }
 0x5ae   : > { %v1583_v7 = vrot.slane %v1575_v0, %v5812_v34  ;;  %v1590_v8 = vrot.slane %v1576_v4, %v5812_v34  ;;  %v1599_v9 = vrot.slane %v1591_v5, %v5812_v34  ;;  %v1606_v10 = vrot.slane %v1592_v6, %v5812_v34  ;;  %v1811_v4 = vld [vmem:[%s5742_s3 + $0xc8] sm:$0xff] }
 0x5af   : > { %2106 = vmatprep.subr.bf16.mxu1 %v4102_v60  ;;  %v4116_v0 = vcombine.high %v1802_v61, %v1810_v62  ;;  %v4115_v5 = vcombine.low %v1802_v61, %v1810_v62  ;;  %v4117_v6 = vcombine.low %v1803_v63, %v1811_v4  ;;  %v1809_v60 = vld [vmem:[%s5742_s3 + $0xb8] sm:$0xff] }
 0x5b0   : > { %v1611_v12 = vcombine.low %v1583_v7, %v1590_v8  ;;  %v4094_v15 = vcombine.high %v1583_v7, %v1590_v8  ;;  %v1627_v16 = vcombine.low %v1599_v9, %v1606_v10  ;;  %v4095_v17 = vcombine.high %v1599_v9, %v1606_v10  ;;  %v1788_v8 = vld [vmem:[%s5742_s3 + $0x10] sm:$0xff]  ;;  %v1789_v10 = vld [vmem:[%s5742_s3 + $0x18] sm:$0xff] }
 0x5b1   : > { %v4118_v7 = vcombine.high %v1803_v63, %v1811_v4  ;;  %2067 = vmatprep.subr.bf16.mxu0 %v4116_v0  ;;  %v1796_v9 = vld [vmem:[%s5742_s3 + $0x50] sm:$0xff]  ;;  %v1817_v61 = vld [vmem:[%s5742_s3 + $0xf8] sm:$0xff] }
 0x5b2   : > { %v1618_v18 = vrot.slane %v1611_v12, %v5803_v24  ;;  %v1626_v20 = vrot.slane %v4094_v15, %v5803_v24  ;;  %v1634_v21 = vrot.slane %v1627_v16, %v5803_v24  ;;  %v1642_v22 = vrot.slane %v4095_v17, %v5803_v24  ;;  %2068 = vmatpush1.bf16.msra.mxu0 %v4115_v5  ;;  %v1797_v12 = vld [vmem:[%s5742_s3 + $0x58] sm:$0xff] }
 0x5b3   : > { %v4104_v11 = vcombine.high %v1788_v8, %v1796_v9  ;;  %v5248_v15 = vmov 0   ;;  %v4103_v16 = vcombine.low %v1788_v8, %v1796_v9  ;;  %v4105_v17 = vcombine.low %v1789_v10, %v1797_v12  ;;  %v4696_v8 = vld [vmem:[%s5749_s15 + $0xc0] sm:$0xff]  }
 0x5b4   : > { %v1644_v14 = vcombine.high %v1618_v18, %v1626_v20  ;;  %v1660_v23 = vcombine.high %v1634_v21, %v1642_v22  ;;  %v1643_v13 = vcombine.low %v1618_v18, %v1626_v20  ;;  %v1659_v25 = vcombine.low %v1634_v21, %v1642_v22  ;;  %2097 = vmatprep.mubr.bf16.mxu0 %v5248_v15  ;;  %v4697_v9 = vld [vmem:[%s5749_s15] sm:$0xff]  }
 0x5b5   : > { %v4106_v18 = vcombine.high %v1789_v10, %v1797_v12  ;;  %2147 = vmatprep.subr.bf16.mxu0 %v4104_v11  ;;  %v4130_v4 = vcombine.high %v1809_v60, %v1817_v61  ;;  %v4698_v10 = vld [vmem:[%s5749_s15 + $0x80] sm:$0xff]   ;;  %v4699_v11 = vld [vmem:[%s5749_s15 + $0x48] sm:$0xff]  }
 0x5b6   : > { %v1658_v2 = vrot.slane %v1644_v14, %v5812_v34  ;;  %v1674_v26 = vrot.slane %v1660_v23, %v5812_v34  ;;  %v1651_v27 = vrot.slane %v1643_v13, %v5812_v34  ;;  %v1667_v1 = vrot.slane %v1659_v25, %v5812_v34  ;;  %v4700_v12 = vld [vmem:[%s5749_s15 + $0xc8] sm:$0xff]  }
 0x5b7   : > { %v5964_v14 = vsub.s32 1, %v5798_v19  ;;  %v5967_v23 = vsub.s32 2, %v5798_v19 }
 0x5b8   : > { %v1677_v3 = vcombine.low %v1658_v2, %v1674_v26  ;;  %v1676_v28 = vcombine.high %v1651_v27, %v1667_v1  ;;  %v1678_v29 = vcombine.high %v1658_v2, %v1674_v26  ;;  %v1675_v30 = vcombine.low %v1651_v27, %v1667_v1  ;;  %v1804_v1 = vld [vmem:[%s5742_s3 + $0x90] sm:$0xff] }
 0x5b9   : > { %v1778_v13 = vrot.slane %v5942_v38, %v5964_v14  ;;  %v1783_v2 = vrot.slane %v5942_v38, %v5967_v23 }
 0x5ba   : > { %1684 = vrot.lane.b32.xlu1 %v1677_v3, %s5245_s21  ;;  %1680 = vrot.lane.b32.xlu0 %v1676_v28, %s5246_s12  ;;  %v1812_v3 = vld [vmem:[%s5742_s3 + $0xd0] sm:$0xff]  ;;  %v1805_v28 = vld [vmem:[%s5742_s3 + $0x98] sm:$0xff] }
 0x5bb   : > { %v4119_v38 = vcombine.low %v1804_v1, %v1812_v3 }
 0x5be   : > { %1688 = vrot.lane.b32.xlu1 %v1678_v29, %s5247_s27  ;;  %v1813_v29 = vld [vmem:[%s5742_s3 + $0xd8] sm:$0xff] }
 0x62c   : > { %v1685_v24 = vpop.permute.xlu1 %1684  ;;  %v1681_v31 = vpop.permute.xlu0 %1680 }
 0x62d   : > { %v1691_v32 = vsel %vm1121_vm3, %v1675_v30, %v1681_v31  ;;  %v4120_v31 = vcombine.high %v1804_v1, %v1812_v3  ;;  %v4713_v1 = vld [vmem:[%s5749_s15 + $0x20] sm:$0xff]  }
 0x62e   : > { %v1693_v34 = vsel %vm1692_vm5, %v1691_v32, %v1685_v24  ;;  %v4122_v32 = vcombine.high %v1805_v28, %v1813_v29  ;;  %v4714_v3 = vld [vmem:[%s5749_s15 + $0xa0] sm:$0xff]  }
 0x630   : > { %v1689_v33 = vpop.permute.xlu1 %1688 }
 0x631   : > { %v1695_v35 = vsel %vm1694_vm6, %v1693_v34, %v1689_v33  ;;  %v1790_v33 = vld [vmem:[%s5742_s3 + $0x20] sm:$0xff] }
 0x632   : > { %v1696_v36 = vpack.c.bf16 %v1695_v35, %v1695_v35  ;;  %v1798_v34 = vld [vmem:[%s5742_s3 + $0x60] sm:$0xff]  ;;  %v1791_v35 = vld [vmem:[%s5742_s3 + $0x28] sm:$0xff] }
 0x634   : > { %4535 = vmatmul.mubr.msk.bf16.vlgmr.msra.gmra.mrb[16].mxu1 %vm627_vm2, %v1696_v36  ;;  %v1799_v36 = vld [vmem:[%s5742_s3 + $0x68] sm:$0xff] }
 0x635   : > { %2107 = vmatpush1.bf16.msra.mxu1 %v4101_v59  ;;  %2138 = vmatprep.mubr.bf16.mxu1 %v5248_v15  ;;  %v1816_v59 = vld [vmem:[%s5742_s3 + $0xf0] sm:$0xff] }
 0x636   : > { %2108 = vmatprep.subr.bf16.mxu1 %v4118_v7  ;;  %v4128_v0 = vcombine.high %v1808_v58, %v1816_v59  ;;  %v4127_v5 = vcombine.low %v1808_v58, %v1816_v59  ;;  %v4695_v7 = vld [vmem:[%s5749_s15 + $0x40] sm:$0xff]  }
 0x639   : > { %2109 = vmatpush1.bf16.msra.mxu1 %v4117_v6  ;;  %v4129_v6 = vcombine.low %v1809_v60, %v1817_v61 }
 0x63a   : > { %2188 = vmatprep.subr.bf16.mxu1 %v4106_v18  ;;  %v4704_v18 = vld [vmem:[%s5749_s15 + $0xd0] sm:$0xff]  }
 0x707   : > { %v1754_v40 = vpop.f32.mrb[16].mxu1 }
 0x708   : > { %v1755_v41 = vadd.f32 %v1754_v40, %v1704_v39  ;;  %v4536_v42 = vpop.f32.mrb[17].mxu1  ;;  %v4121_v39 = vcombine.low %v1805_v28, %v1813_v29  ;;  %v4108_v40 = vcombine.high %v1790_v33, %v1798_v34  ;;  %v4715_v28 = vld [vmem:[%s5749_s15 + $0x68] sm:$0xff]  }
 0x709   : > { %v1757_v43 = vpop.f32.mrb[18].mxu1  ;;  %v1806_v42 = vld [vmem:[%s5742_s3 + $0xa0] sm:$0xff]  ;;  %v4716_v29 = vld [vmem:[%s5749_s15 + $0xe8] sm:$0xff]  }
 0x70a   : > { %v4537_v44 = vpop.f32.mrb[19].mxu1  ;;  %v1760_v46 = vadd.f32 %v4843_v45, %v1755_v41  ;;  %v4110_v41 = vcombine.high %v1791_v35, %v1799_v36  ;;  %v1814_v43 = vld [vmem:[%s5742_s3 + $0xe0] sm:$0xff]  ;;  %v1815_v45 = vld [vmem:[%s5742_s3 + $0xe8] sm:$0xff] }
 0x70b   : > { %v1807_v44 = vld [vmem:[%s5742_s3 + $0xa8] sm:$0xff]  ;;  %v4123_v54 = vcombine.low %v1806_v42, %v1814_v43 }
 0x70c   : > { %v1761_v47 = vsel %vm627_vm2, %v1760_v46, 0.0  ;;  %v4125_v55 = vcombine.low %v1807_v44, %v1815_v45 }
 0x70d   : > { %1762 = vadd.xlane.f32.xlu0 %v1761_v47  ;;  %v4109_v47 = vcombine.low %v1791_v35, %v1799_v36  ;;  %v4722_v35 = vld [vmem:[%s5749_s15 + $0xb0] sm:$0xff]   ;;  %v4723_v36 = vld [vmem:[%s5749_s15 + $0x78] sm:$0xff]  }
 0x79a   : > { %v1763_v48 = vpop.xlane.xlu0 %1762 }
 0x79b   : > { %v1765_v49 = vmul.f32 0.03125, %v1763_v48  ;;  %v4124_v48 = vcombine.high %v1806_v42, %v1814_v43  ;;  %v4728_v42 = vld [vmem:[%s5749_s15 + $0x1c0] sm:$0xff]   ;;  %v1848_v43 = vsub.s32 6, %v5798_v19 }
 0x79d   : > { %v1766_v50 = vsub.f32 %v1760_v46, %v1765_v49  ;;  %v4107_v46 = vcombine.low %v1790_v33, %v1798_v34  ;;  %v4126_v49 = vcombine.high %v1807_v44, %v1815_v45  ;;  %v4720_v33 = vld [vmem:[%s5749_s15 + $0xf0] sm:$0xff]  }
 0x79e   : > { %v4721_v34 = vld [vmem:[%s5749_s15 + $0x30] sm:$0xff]  }
 0x79f   : > { %v1767_v51 = vmul.f32 %v1766_v50, %v1766_v50  ;;  %v6058_v44 = vld [vmem:[%s517_s30 + $0x8] sm:$0xff] }
 0x7a0   : > { %v6063_v45 = vrot.slane %v6058_v44, %v1848_v43 }
 0x7a1   : > { %v1768_v52 = vsel %vm627_vm2, %v1767_v51, 0.0  ;;  %v1800_v51 = vld [vmem:[%s5742_s3 + $0x70] sm:$0xff] }
 0x7a2   : > { %1769 = vadd.xlane.f32.xlu1 %v1768_v52  ;;  %v1793_v52 = vld [vmem:[%s5742_s3 + $0x38] sm:$0xff] }
 0x7a3   : > { %v4114_v57 = vcombine.high %v1793_v52, %v1801_v53  ;;  %v4113_v63 = vcombine.low %v1793_v52, %v1801_v53 }
 0x82f   : > { %v1770_v20 = vpop.xlane.xlu1 %1769 }
 0x830   : > { %v1771_v21 = vmul.f32 0.03125, %v1770_v20  ;;  %v4705_v20 = vld [vmem:[%s5749_s15 + $0x10] sm:$0xff]  }
 0x832   : > { %v1772_v22 = vadd.f32 1e-05, %v1771_v21  ;;  %v4706_v21 = vld [vmem:[%s5749_s15 + $0x90] sm:$0xff]  }
 0x834   : > { %4839 = vrsqrt.f32 %v1772_v22  ;;  %v4707_v22 = vld [vmem:[%s5749_s15 + $0x58] sm:$0xff]  }
 0x83e   : > { %v4840_v25 = vpop.eup %4839 }
 0x83f   : > { %v1774_v26 = vmul.f32 %v4840_v25, %v1766_v50  ;;  %v1792_v50 = vld [vmem:[%s5742_s3 + $0x30] sm:$0xff]  ;;  %v4709_v25 = vld [vmem:[%s5749_s15 + $0x18] sm:$0xff]  }
 0x840   : > { %v4112_v56 = vcombine.high %v1792_v50, %v1800_v51  ;;  %v4111_v62 = vcombine.low %v1792_v50, %v1800_v51 }
 0x841   : > { %v1779_v27 = vmul.f32 %v1778_v13, %v1774_v26  ;;  %v4708_v13 = vld [vmem:[%s5749_s15 + $0xd8] sm:$0xff]   ;;  %v4711_v26 = vld [vmem:[%s5749_s15 + $0x60] sm:$0xff]  }
 0x843   : > { %v5977_v30 = vadd.f32 %v1783_v2, %v1779_v27  ;;  %v4710_v2 = vld [vmem:[%s5749_s15 + $0x98] sm:$0xff]   ;;  %v4712_v27 = vld [vmem:[%s5749_s15 + $0xe0] sm:$0xff]  }
 0x845   : > { %v5981_v24 = vpack.c.bf16 %v5977_v30, %v5977_v30 }
 0x847   : > { %4131 = vmatmul.mubr.msk.bf16.vlgmr.msra.gmra.mrb[20].mxu0 %vm627_vm2, %v5981_v24  ;;  %4132 = vmatmul.mubr.msk.bf16.vlgmr.msra.gmra.mrb[20].mxu1 %vm627_vm2, %v5981_v24 }
 0x848   : > { %2148 = vmatpush1.bf16.msra.mxu0 %v4103_v16  ;;  %2189 = vmatpush1.bf16.msra.mxu1 %v4105_v17  ;;  %v4702_v16 = vld [vmem:[%s5749_s15 + $0x88] sm:$0xff]   ;;  %v4703_v17 = vld [vmem:[%s5749_s15 + $0x50] sm:$0xff]  }
 0x849   : > { %2149 = vmatprep.subr.bf16.mxu0 %v4120_v31  ;;  %2190 = vmatprep.subr.bf16.mxu1 %v4122_v32  ;;  %v4718_v31 = vld [vmem:[%s5749_s15 + $0xa8] sm:$0xff]   ;;  %v4719_v32 = vld [vmem:[%s5749_s15 + $0x70] sm:$0xff]  }
 0x84a   : > { %2179 = vmatprep.mubr.bf16.mxu0 %v5248_v15  ;;  %2220 = vmatprep.mubr.bf16.mxu1 %v5248_v15 }
 0x84c   : > { %2150 = vmatpush1.bf16.msra.mxu0 %v4119_v38  ;;  %2191 = vmatpush1.bf16.msra.mxu1 %v4121_v39  ;;  %v4724_v38 = vld [vmem:[%s5749_s15 + $0xf8] sm:$0xff]  }
 0x84d   : > { %2229 = vmatprep.subr.bf16.mxu0 %v4108_v40  ;;  %2270 = vmatprep.subr.bf16.mxu1 %v4110_v41  ;;  %v4725_v39 = vld [vmem:[%s5749_s15 + $0x38] sm:$0xff]   ;;  %v4727_v41 = vld [vmem:[%s5749_s15 + $0x140] sm:$0xff]  }
 0x84e   : > { %v4726_v40 = vld [vmem:[%s5749_s15 + $0xb8] sm:$0xff]  }
 0x84f   : > { %4133 = vmatmul.mubr.msk.bf16.vlgmr.msra.gmra.mrb[24].mxu0 %vm627_vm2, %v5981_v24  ;;  %4134 = vmatmul.mubr.msk.bf16.vlgmr.msra.gmra.mrb[24].mxu1 %vm627_vm2, %v5981_v24 }
 0x850   : > { %2230 = vmatpush1.bf16.msra.mxu0 %v4107_v46  ;;  %2271 = vmatpush1.bf16.msra.mxu1 %v4109_v47  ;;  %v6067_v46 = vld [vmem:[%s517_s30] sm:$0xff]  ;;  %v6070_v47 = vsub.s32 3, %v5798_v19  ;;  %s5089_s30 = sshll.u32 %s5249_s2, 4  ;;  %s5090_s30 = int_to_ptr.vmem [resolvable:$false] %s5089_s30 }
 0x851   : > { %2231 = vmatprep.subr.bf16.mxu0 %v4124_v48  ;;  %2272 = vmatprep.subr.bf16.mxu1 %v4126_v49  ;;  %v1825_v48 = vrot.slane %v6067_v46, %v5939_v37  ;;  %v1833_v49 = vrot.slane %v6067_v46, %v5967_v23  ;;  %v1829_v50 = vrot.slane %v6067_v46, %v5964_v14  ;;  %s5091_s17 = scalar_lea.vmem %s5090_s30, 256  ;;  %p5092_p2 = scmp.lt.s32.totalorder %s6250_s19, %s5090_s30 }
 0x852   : > { %2261 = vmatprep.mubr.bf16.mxu0 %v5248_v15  ;;  %2302 = vmatprep.mubr.bf16.mxu1 %v5248_v15  ;;  %v1837_v51 = vrot.slane %v6067_v46, %v6070_v47  ;;  %p5093_p7 = scmp.lt.s32.totalorder %s5091_s17, %s5085_s18 }
 0x854   : > { %2232 = vmatpush1.bf16.msra.mxu0 %v4123_v54  ;;  %2273 = vmatpush1.bf16.msra.mxu1 %v4125_v55  ;;  %p5094_p3 = por %p5093_p7, %p5092_p2 }
 0x855   : > { %2311 = vmatprep.subr.bf16.mxu0 %v4112_v56  ;;  %2352 = vmatprep.subr.bf16.mxu1 %v4114_v57 }
 0x856   : > { %p5095_p13 = pnand %p5094_p3, %p5088_p5 }
 0x857   : > { %4135 = vmatmul.mubr.msk.bf16.vlgmr.msra.gmra.mrb[28].mxu0 %vm627_vm2, %v5981_v24  ;;  %4136 = vmatmul.mubr.msk.bf16.vlgmr.msra.gmra.mrb[28].mxu1 %vm627_vm2, %v5981_v24 }
 0x858   : > { %2312 = vmatpush1.bf16.msra.mxu0 %v4111_v62  ;;  %2353 = vmatpush1.bf16.msra.mxu1 %v4113_v63  ;;  %v6081_v62 = vsub.s32 5, %v5798_v19  ;;  %v1852_v63 = vsub.s32 7, %v5798_v19 }
 0x859   : > { %2313 = vmatprep.subr.bf16.mxu0 %v4128_v0  ;;  %2354 = vmatprep.subr.bf16.mxu1 %v4130_v4 }
 0x85a   : > { %2343 = vmatprep.mubr.bf16.mxu0 %v5248_v15  ;;  %2384 = vmatprep.mubr.bf16.mxu1 %v5248_v15  ;;  %v4701_v15 = vld [vmem:[%s5749_s15 + $0x8] sm:$0xff]  }
 0x85c   : > { %2314 = vmatpush1.bf16.msra.mxu0 %v4127_v5  ;;  %2355 = vmatpush1.bf16.msra.mxu1 %v4129_v6 }
 0x85d   : > { %4298 = vmatprep.subr.bf16.mxu0 %v4695_v7  ;;  %4320 = vmatprep.subr.bf16.mxu1 %v4696_v8 }
 0x85f   : > { %4137 = vmatmul.mubr.msk.bf16.vlgmr.msra.gmra.mrb[32].mxu0 %vm627_vm2, %v5981_v24  ;;  %4138 = vmatmul.mubr.msk.bf16.vlgmr.msra.gmra.mrb[32].mxu1 %vm627_vm2, %v5981_v24  ;;  %v4717_v24 = vld [vmem:[%s5749_s15 + $0x28] sm:$0xff]  }
 0x860   : > { %4299 = vmatpush3.bf16.msra.mxu0 %v4697_v9  ;;  %4321 = vmatpush3.bf16.msra.mxu1 %v4698_v10 }
 0x861   : > { %4300 = vmatprep.subr.bf16.mxu0 %v4699_v11  ;;  %4322 = vmatprep.subr.bf16.mxu1 %v4700_v12  ;;  %v1845_v11 = vrot.slane %v6067_v46, %v6081_v62  ;;  %v1853_v12 = vrot.slane %v6067_v46, %v1852_v63 }
 0x864   : > { %4301 = vmatpush3.bf16.msra.mxu0 %v4701_v15  ;;  %4323 = vmatpush3.bf16.msra.mxu1 %v4702_v16  ;;  %v4729_v15 = vld [vmem:[%s5749_s15 + $0x100] sm:$0xff]  }
 0x865   : > { %4302 = vmatprep.subr.bf16.mxu0 %v4703_v17  ;;  %4324 = vmatprep.subr.bf16.mxu1 %v4704_v18  ;;  %v4730_v16 = vld [vmem:[%s5749_s15 + $0x180] sm:$0xff]  }
 0x868   : > { %4303 = vmatpush3.bf16.msra.mxu0 %v4705_v20  ;;  %4325 = vmatpush3.bf16.msra.mxu1 %v4706_v21  ;;  %v4731_v20 = vld [vmem:[%s5749_s15 + $0x148] sm:$0xff]  }
 0x869   : > { %4304 = vmatprep.subr.bf16.mxu0 %v4707_v22  ;;  %4326 = vmatprep.subr.bf16.mxu1 %v4708_v13  ;;  %v4732_v21 = vld [vmem:[%s5749_s15 + $0x1c8] sm:$0xff]  }
 0x86c   : > { %4305 = vmatpush3.bf16.msra.mxu0 %v4709_v25  ;;  %4327 = vmatpush3.bf16.msra.mxu1 %v4710_v2 }
 0x86d   : > { %4306 = vmatprep.subr.bf16.mxu0 %v4711_v26  ;;  %4328 = vmatprep.subr.bf16.mxu1 %v4712_v27 }
 0x870   : > { %4307 = vmatpush3.bf16.msra.mxu0 %v4713_v1  ;;  %4329 = vmatpush3.bf16.msra.mxu1 %v4714_v3 }
 0x871   : > { %4308 = vmatprep.subr.bf16.mxu0 %v4715_v28  ;;  %4330 = vmatprep.subr.bf16.mxu1 %v4716_v29  ;;  %v4733_v28 = vld [vmem:[%s5749_s15 + $0x108] sm:$0xff]  }
 0x872   : > { %v4734_v29 = vld [vmem:[%s5749_s15 + $0x188] sm:$0xff]  }
 0x874   : > { %4309 = vmatpush3.bf16.msra.mxu0 %v4717_v24  ;;  %4331 = vmatpush3.bf16.msra.mxu1 %v4718_v31 }
 0x875   : > { %4310 = vmatprep.subr.bf16.mxu0 %v4719_v32  ;;  %4332 = vmatprep.subr.bf16.mxu1 %v4720_v33  ;;  %v4735_v32 = vld [vmem:[%s5749_s15 + $0x150] sm:$0xff]  }
 0x876   : > { %v4736_v33 = vld [vmem:[%s5749_s15 + $0x1d0] sm:$0xff]  }
 0x878   : > { %4311 = vmatpush3.bf16.msra.mxu0 %v4721_v34  ;;  %4333 = vmatpush3.bf16.msra.mxu1 %v4722_v35 }
 0x879   : > { %4312 = vmatprep.subr.bf16.mxu0 %v4723_v36  ;;  %4334 = vmatprep.subr.bf16.mxu1 %v4724_v38 }
 0x87c   : > { %4313 = vmatpush3.bf16.msra.mxu0 %v4725_v39  ;;  %4335 = vmatpush3.bf16.msra.mxu1 %v4726_v40  ;;  %v4737_v39 = vld [vmem:[%s5749_s15 + $0x110] sm:$0xff]  }
 0x87d   : > { %4342 = vmatprep.subr.bf16.mxu0 %v4727_v41  ;;  %4364 = vmatprep.subr.bf16.mxu1 %v4728_v42  ;;  %v4738_v40 = vld [vmem:[%s5749_s15 + $0x190] sm:$0xff]   ;;  %v4739_v41 = vld [vmem:[%s5749_s15 + $0x158] sm:$0xff]  }
 0x87e   : > { %v4740_v42 = vld [vmem:[%s5749_s15 + $0x1d8] sm:$0xff]  }
 0x91a   : > { %v2099_v52 = vpop.f32.mrb[20].mxu0  ;;  %v2140_v53 = vpop.f32.mrb[20].mxu1 }
 0x91b   : > { %v2100_v54 = vadd.f32 %v2099_v52, %v1825_v48  ;;  %v2141_v55 = vadd.f32 %v2140_v53, %v1833_v49  ;;  %v2101_v56 = vpop.f32.mrb[21].mxu0  ;;  %v2142_v57 = vpop.f32.mrb[21].mxu1 }
 0x91c   : > { %v2102_v58 = vadd.f32 %v2101_v56, %v1829_v50  ;;  %v2143_v59 = vadd.f32 %v2142_v57, %v1837_v51  ;;  %v2103_v60 = vpop.f32.mrb[22].mxu0  ;;  %v2144_v61 = vpop.f32.mrb[22].mxu1  ;;  %v6112_v56 = vsub.s32 4, %v5798_v19 }
 0x91d   : > { %v2393_v0 = vmax.f32 %v2100_v54, 0.0  ;;  %v2395_v4 = vmax.f32 %v2141_v55, 0.0  ;;  %v2104_v5 = vpop.f32.mrb[23].mxu0  ;;  %v2145_v6 = vpop.f32.mrb[23].mxu1  ;;  %v4741_v54 = vld [vmem:[%s5749_s15 + $0x118] sm:$0xff]   ;;  %v4744_v60 = vld [vmem:[%s5749_s15 + $0x1e0] sm:$0xff]  }
 0x91e   : > { %v2394_v7 = vmax.f32 %v2102_v58, 0.0  ;;  %v2396_v8 = vmax.f32 %v2143_v59, 0.0  ;;  %v4742_v55 = vld [vmem:[%s5749_s15 + $0x198] sm:$0xff]   ;;  %v4743_v59 = vld [vmem:[%s5749_s15 + $0x160] sm:$0xff]   ;;  %v1873_v61 = vrot.slane %v6058_v44, %v6112_v56  ;;  %v4747_v5 = vld [vmem:[%s5749_s15 + $0x168] sm:$0xff]  }
 0x91f   : > { %v2409_v17 = vpack.c.bf16 %v2393_v0, %v2393_v0  ;;  %v2411_v18 = vpack.c.bf16 %v2395_v4, %v2395_v4  ;;  %v4745_v0 = vld [vmem:[%s5749_s15 + $0x120] sm:$0xff]   ;;  %v4748_v6 = vld [vmem:[%s5749_s15 + $0x1e8] sm:$0xff]  }
 0x920   : > { %v2410_v9 = vpack.c.bf16 %v2394_v7, %v2394_v7  ;;  %v2412_v10 = vpack.c.bf16 %v2396_v8, %v2396_v8  ;;  %v4746_v4 = vld [vmem:[%s5749_s15 + $0x1a0] sm:$0xff]  }
 0x922   : > { %v6093_v22 = vpop.f32.mrb[24].mxu0  ;;  %v6095_v13 = vpop.f32.mrb[24].mxu1  ;;  %3485 = vmatprep.mubr.bf16.mxu0 %v2410_v9  ;;  %3525 = vmatprep.mubr.bf16.mxu1 %v2412_v10 }
 0x923   : > { %v2183_v25 = vpop.f32.mrb[25].mxu0  ;;  %v2224_v2 = vpop.f32.mrb[25].mxu1  ;;  %3486 = vmatmul.mubr.bf16.vlgmr.msra.gmra.mrb[36].mxu0 %v2409_v17  ;;  %3526 = vmatmul.mubr.bf16.vlgmr.msra.gmra.mrb[36].mxu1 %v2411_v18  ;;  %v4749_v17 = vld [vmem:[%s5749_s15 + $0x128] sm:$0xff]  }
 0x924   : > { %v2184_v26 = vadd.f32 %v2183_v25, %v1845_v11  ;;  %v2225_v27 = vadd.f32 %v2224_v2, %v1853_v12  ;;  %4343 = vmatpush3.bf16.msra.mxu0 %v4729_v15  ;;  %4365 = vmatpush3.bf16.msra.mxu1 %v4730_v16  ;;  %v2185_v1 = vpop.f32.mrb[26].mxu0  ;;  %v2226_v3 = vpop.f32.mrb[26].mxu1  ;;  %v4750_v18 = vld [vmem:[%s5749_s15 + $0x1a8] sm:$0xff]   ;;  %v4751_v2 = vld [vmem:[%s5749_s15 + $0x170] sm:$0xff]  }
 0x925   : > { %v2186_v24 = vpop.f32.mrb[27].mxu0  ;;  %v2227_v31 = vpop.f32.mrb[27].mxu1  ;;  %4344 = vmatprep.subr.bf16.mxu0 %v4731_v20  ;;  %4366 = vmatprep.subr.bf16.mxu1 %v4732_v21  ;;  %v1841_v20 = vrot.slane %v6067_v46, %v6112_v56  ;;  %v1869_v1 = vrot.slane %v6058_v44, %v6070_v47  ;;  %v4753_v3 = vld [vmem:[%s5749_s15 + $0x130] sm:$0xff]  }
 0x926   : > { %v2398_v34 = vmax.f32 %v2184_v26, 0.0  ;;  %v2400_v35 = vmax.f32 %v2225_v27, 0.0  ;;  %v4752_v26 = vld [vmem:[%s5749_s15 + $0x1f0] sm:$0xff]   ;;  %v1861_v27 = vrot.slane %v6058_v44, %v5964_v14  ;;  %v4756_v24 = vld [vmem:[%s5749_s15 + $0x1f8] sm:$0xff]  }
 0x928   : > { %v2414_v36 = vpack.c.bf16 %v2398_v34, %v2398_v34  ;;  %v2416_v38 = vpack.c.bf16 %v2400_v35, %v2400_v35  ;;  %4345 = vmatpush3.bf16.msra.mxu0 %v4733_v28  ;;  %4367 = vmatpush3.bf16.msra.mxu1 %v4734_v29  ;;  %v4755_v29 = vld [vmem:[%s5749_s15 + $0x178] sm:$0xff]  }
 0x929   : > { %4346 = vmatprep.subr.bf16.mxu0 %v4735_v32  ;;  %4368 = vmatprep.subr.bf16.mxu1 %v4736_v33  ;;  %v4757_v32 = vld [vmem:[%s5749_s15 + $0x138] sm:$0xff]  }
 0x92a   : > { %v6105_v48 = vpop.f32.mrb[28].mxu0  ;;  %v6107_v49 = vpop.f32.mrb[28].mxu1  ;;  %3565 = vmatprep.mubr.bf16.mxu0 %v2414_v36  ;;  %3605 = vmatprep.mubr.bf16.mxu1 %v2416_v38  ;;  %v4758_v33 = vld [vmem:[%s5749_s15 + $0x1b8] sm:$0xff]  }
 0x92b   : > { %v2265_v50 = vpop.f32.mrb[29].mxu0  ;;  %v2306_v51 = vpop.f32.mrb[29].mxu1 }
 0x92c   : > { %4347 = vmatpush3.bf16.msra.mxu0 %v4737_v39  ;;  %4369 = vmatpush3.bf16.msra.mxu1 %v4738_v40  ;;  %v2267_v52 = vpop.f32.mrb[30].mxu0  ;;  %v2308_v53 = vpop.f32.mrb[30].mxu1  ;;  %v2266_v14 = vadd.f32 %v2265_v50, %v1861_v27  ;;  %v2307_v31 = vadd.f32 %v2306_v51, %v1869_v1  ;;  %v4761_v39 = vld [vmem:[%s5749_s15 + $0x200] sm:$0xff]   ;;  %v4763_v51 = vld [vmem:[%s5749_s15 + $0x248] sm:$0xff]   ;;  %v1885_v27 = vrot.slane %v6058_v44, %v1852_v63  ;;  %v4789_v63 = vld [vmem:[%s5749_s15 + $0x238] sm:$0xff]  }
 0x92d   : > { %v2268_v57 = vpop.f32.mrb[31].mxu0  ;;  %v2309_v58 = vpop.f32.mrb[31].mxu1  ;;  %4348 = vmatprep.subr.bf16.mxu0 %v4739_v41  ;;  %4370 = vmatprep.subr.bf16.mxu1 %v4740_v42  ;;  %v4762_v42 = vld [vmem:[%s5749_s15 + $0x280] sm:$0xff]   ;;  %v4764_v52 = vld [vmem:[%s5749_s15 + $0x2c8] sm:$0xff]  }
 0x92e   : > { %v2402_v36 = vmax.f32 %v2266_v14, 0.0  ;;  %v2404_v38 = vmax.f32 %v2307_v31, 0.0  ;;  %v4767_v57 = vld [vmem:[%s5749_s15 + $0x250] sm:$0xff]  }
 0x92f   : > { %v4768_v58 = vld [vmem:[%s5749_s15 + $0x2d0] sm:$0xff]  }
 0x930   : > { %4349 = vmatpush3.bf16.msra.mxu0 %v4741_v54  ;;  %4371 = vmatpush3.bf16.msra.mxu1 %v4742_v55  ;;  %v2418_v50 = vpack.c.bf16 %v2402_v36, %v2402_v36  ;;  %v2420_v53 = vpack.c.bf16 %v2404_v38, %v2404_v38  ;;  %v4765_v54 = vld [vmem:[%s5749_s15 + $0x208] sm:$0xff]  }
 0x931   : > { %4350 = vmatprep.subr.bf16.mxu0 %v4743_v59  ;;  %4372 = vmatprep.subr.bf16.mxu1 %v4744_v60  ;;  %v4766_v55 = vld [vmem:[%s5749_s15 + $0x288] sm:$0xff]   ;;  %v4769_v59 = vld [vmem:[%s5749_s15 + $0x210] sm:$0xff]  }
 0x932   : > { %v2345_v7 = vpop.f32.mrb[32].mxu0  ;;  %v2386_v8 = vpop.f32.mrb[32].mxu1  ;;  %v4770_v60 = vld [vmem:[%s5749_s15 + $0x290] sm:$0xff]   ;;  %v4797_v36 = vld [vmem:[%s5749_s15 + $0x308] sm:$0xff]  }
 0x933   : > { %v6122_v9 = vadd.f32 %v2345_v7, %v1873_v61  ;;  %v6125_v10 = vadd.f32 %v2386_v8, %v6063_v45  ;;  %v6127_v11 = vpop.f32.mrb[33].mxu0  ;;  %v6129_v12 = vpop.f32.mrb[33].mxu1  ;;  %v1849_v45 = vrot.slane %v6067_v46, %v1848_v43  ;;  %v4754_v43 = vld [vmem:[%s5749_s15 + $0x1b0] sm:$0xff]   ;;  %v2182_v46 = vadd.f32 %v6093_v22, %v1841_v20  ;;  %v4759_v22 = vld [vmem:[%s5749_s15 + $0x240] sm:$0xff]   ;;  %v4771_v61 = vld [vmem:[%s5749_s15 + $0x258] sm:$0xff]  }
 0x934   : > { %4351 = vmatpush3.bf16.msra.mxu0 %v4745_v0  ;;  %4373 = vmatpush3.bf16.msra.mxu1 %v4746_v4  ;;  %v2349_v15 = vpop.f32.mrb[34].mxu0  ;;  %v2390_v16 = vpop.f32.mrb[34].mxu1  ;;  %v4772_v0 = vld [vmem:[%s5749_s15 + $0x2d8] sm:$0xff]   ;;  %v4776_v7 = vld [vmem:[%s5749_s15 + $0x2e0] sm:$0xff]   ;;  %v1857_v20 = vrot.slane %v6058_v44, %v5939_v37  ;;  %v4785_v37 = vld [vmem:[%s5749_s15 + $0x230] sm:$0xff]  }
 0x935   : > { %v2350_v21 = vpop.f32.mrb[35].mxu0  ;;  %v2391_v25 = vpop.f32.mrb[35].mxu1  ;;  %4352 = vmatprep.subr.bf16.mxu0 %v4747_v5  ;;  %4374 = vmatprep.subr.bf16.mxu1 %v4748_v6  ;;  %v2223_v28 = vadd.f32 %v6095_v13, %v1849_v45  ;;  %v2397_v34 = vmax.f32 %v2182_v46, 0.0  ;;  %v4760_v13 = vld [vmem:[%s5749_s15 + $0x2c0] sm:$0xff]   ;;  %v4773_v4 = vld [vmem:[%s5749_s15 + $0x218] sm:$0xff]   ;;  %v4779_v16 = vld [vmem:[%s5749_s15 + $0x268] sm:$0xff]  }
 0x936   : > { %v4774_v5 = vld [vmem:[%s5749_s15 + $0x298] sm:$0xff]   ;;  %v4775_v6 = vld [vmem:[%s5749_s15 + $0x260] sm:$0xff]   ;;  %v4782_v45 = vld [vmem:[%s5749_s15 + $0x2a8] sm:$0xff]   ;;  %v1865_v25 = vrot.slane %v6058_v44, %v5967_v23  ;;  %v2264_v1 = vadd.f32 %v6105_v48, %v1857_v20  ;;  %v2407_v20 = vmax.f32 %v6125_v10, 0.0 }
 0x937   : > { %v2399_v35 = vmax.f32 %v2223_v28, 0.0  ;;  %v2413_v40 = vpack.c.bf16 %v2397_v34, %v2397_v34  ;;  %v4777_v8 = vld [vmem:[%s5749_s15 + $0x220] sm:$0xff]   ;;  %v4783_v21 = vld [vmem:[%s5749_s15 + $0x270] sm:$0xff]   ;;  %v4787_v23 = vld [vmem:[%s5749_s15 + $0x278] sm:$0xff]  }
 0x938   : > { %4353 = vmatpush3.bf16.msra.mxu0 %v4749_v17  ;;  %4375 = vmatpush3.bf16.msra.mxu1 %v4750_v18  ;;  %v4778_v15 = vld [vmem:[%s5749_s15 + $0x2a0] sm:$0xff]   ;;  %v4780_v17 = vld [vmem:[%s5749_s15 + $0x2e8] sm:$0xff]   ;;  %v4788_v46 = vld [vmem:[%s5749_s15 + $0x2f8] sm:$0xff]   ;;  %v2401_v28 = vmax.f32 %v2264_v1, 0.0 }
 0x939   : > { %4354 = vmatprep.subr.bf16.mxu0 %v4751_v2  ;;  %4376 = vmatprep.subr.bf16.mxu1 %v4752_v26  ;;  %v2415_v41 = vpack.c.bf16 %v2399_v35, %v2399_v35  ;;  %v4781_v18 = vld [vmem:[%s5749_s15 + $0x228] sm:$0xff]   ;;  %v4784_v2 = vld [vmem:[%s5749_s15 + $0x2f0] sm:$0xff]   ;;  %v1877_v26 = vrot.slane %v6058_v44, %v6081_v62  ;;  %v2389_v44 = vadd.f32 %v6129_v12, %v1885_v27  ;;  %v4790_v48 = vld [vmem:[%s5749_s15 + $0x2b8] sm:$0xff]  }
 0x93a   : > { %v4794_v12 = vld [vmem:[%s5749_s15 + $0x380] sm:$0xff]   ;;  %v4795_v34 = vld [vmem:[%s5749_s15 + $0x348] sm:$0xff]  }
 0x93b   : > { %v2348_v19 = vadd.f32 %v6127_v11, %v1877_v26  ;;  %v2408_v31 = vmax.f32 %v2389_v44, 0.0  ;;  %v4793_v11 = vld [vmem:[%s5749_s15 + $0x300] sm:$0xff]   ;;  %v4798_v38 = vld [vmem:[%s5749_s15 + $0x388] sm:$0xff]  }
 0x93c   : > { %4355 = vmatpush3.bf16.msra.mxu0 %v4753_v3  ;;  %4377 = vmatpush3.bf16.msra.mxu1 %v4754_v43  ;;  %v4786_v3 = vld [vmem:[%s5749_s15 + $0x2b0] sm:$0xff]   ;;  %v2305_v43 = vadd.f32 %v6107_v49, %v1865_v25  ;;  %v4792_v49 = vld [vmem:[%s5749_s15 + $0x3c0] sm:$0xff]  }
 0x93d   : > { %4356 = vmatprep.subr.bf16.mxu0 %v4755_v29  ;;  %4378 = vmatprep.subr.bf16.mxu1 %v4756_v24  ;;  %v4791_v29 = vld [vmem:[%s5749_s15 + $0x340] sm:$0xff]   ;;  %v2406_v14 = vmax.f32 %v2348_v19, 0.0 }
 0x93e   : > { %v2403_v24 = vmax.f32 %v2305_v43, 0.0  ;;  %v6232_v26 = vld [vmem:[%s5759_s29] sm:$0x3f] }
 0x93f   : > { %v2422_v35 = vpack.c.bf16 %v2406_v14, %v2406_v14  ;;  %v2684_v27 = vrot.slane %v6232_v26, %v6070_v47 }
 0x940   : > { %4357 = vmatpush3.bf16.msra.mxu0 %v4757_v32  ;;  %4379 = vmatpush3.bf16.msra.mxu1 %v4758_v33  ;;  %v2417_v32 = vpack.c.bf16 %v2401_v28, %v2401_v28  ;;  %v2419_v33 = vpack.c.bf16 %v2403_v24, %v2403_v24 }
 0x941   : > { %4386 = vmatprep.subr.bf16.mxu0 %v4759_v22  ;;  %4408 = vmatprep.subr.bf16.mxu1 %v4760_v13  ;;  %v4796_v22 = vld [vmem:[%s5749_s15 + $0x3c8] sm:$0xff]   ;;  %v2424_v13 = vpack.c.bf16 %v2408_v31, %v2408_v31 }
 0x943   : > { %3566 = vmatmul.mubr.bf16.vlgmr.msra.gmra.mrb[40].mxu0 %v2413_v40  ;;  %3606 = vmatmul.mubr.bf16.vlgmr.msra.gmra.mrb[40].mxu1 %v2415_v41  ;;  %v4800_v40 = vld [vmem:[%s5749_s15 + $0x3d0] sm:$0xff]  }
 0x944   : > { %4387 = vmatpush3.bf16.msra.mxu0 %v4761_v39  ;;  %3645 = vmatprep.mubr.bf16.mxu0 %v2418_v50  ;;  %v4799_v39 = vld [vmem:[%s5749_s15 + $0x350] sm:$0xff]   ;;  %v4803_v50 = vld [vmem:[%s5749_s15 + $0x358] sm:$0xff]  }
 0x945   : > { %4409 = vmatpush3.bf16.msra.mxu1 %v4762_v42  ;;  %3685 = vmatprep.mubr.bf16.mxu1 %v2420_v53  ;;  %v4801_v41 = vld [vmem:[%s5749_s15 + $0x310] sm:$0xff]   ;;  %v4806_v53 = vld [vmem:[%s5749_s15 + $0x398] sm:$0xff]  }
 0x946   : > { %4388 = vmatprep.subr.bf16.mxu0 %v4763_v51  ;;  %4410 = vmatprep.subr.bf16.mxu1 %v4764_v52  ;;  %v4802_v42 = vld [vmem:[%s5749_s15 + $0x390] sm:$0xff]   ;;  %v4804_v51 = vld [vmem:[%s5749_s15 + $0x3d8] sm:$0xff]  }
 0x947   : > { %v4805_v52 = vld [vmem:[%s5749_s15 + $0x318] sm:$0xff]  }
 0x948   : > { %4389 = vmatpush3.bf16.msra.mxu0 %v4765_v54  ;;  %v4807_v54 = vld [vmem:[%s5749_s15 + $0x360] sm:$0xff]  }
 0x949   : > { %4411 = vmatpush3.bf16.msra.mxu1 %v4766_v55  ;;  %4390 = vmatprep.subr.bf16.mxu0 %v4767_v57  ;;  %v4808_v55 = vld [vmem:[%s5749_s15 + $0x3e0] sm:$0xff]  }
 0x94a   : > { %4412 = vmatprep.subr.bf16.mxu1 %v4768_v58  ;;  %v4809_v57 = vld [vmem:[%s5749_s15 + $0x320] sm:$0xff]  }
 0x94b   : > { %v4810_v58 = vld [vmem:[%s5749_s15 + $0x3a0] sm:$0xff]  }
 0x94c   : > { %4391 = vmatpush3.bf16.msra.mxu0 %v4769_v59  ;;  %v4811_v59 = vld [vmem:[%s5749_s15 + $0x368] sm:$0xff]  }
 0x94d   : > { %4413 = vmatpush3.bf16.msra.mxu1 %v4770_v60  ;;  %4392 = vmatprep.subr.bf16.mxu0 %v4771_v61  ;;  %v4812_v60 = vld [vmem:[%s5749_s15 + $0x3e8] sm:$0xff]  }
 0x94e   : > { %4414 = vmatprep.subr.bf16.mxu1 %v4772_v0  ;;  %v4813_v61 = vld [vmem:[%s5749_s15 + $0x328] sm:$0xff]  }
 0x94f   : > { %v4814_v0 = vld [vmem:[%s5749_s15 + $0x3a8] sm:$0xff]  }
 0x950   : > { %4393 = vmatpush3.bf16.msra.mxu0 %v4773_v4  ;;  %v4815_v4 = vld [vmem:[%s5749_s15 + $0x370] sm:$0xff]  }
 0x951   : > { %4415 = vmatpush3.bf16.msra.mxu1 %v4774_v5  ;;  %4394 = vmatprep.subr.bf16.mxu0 %v4775_v6  ;;  %v4816_v5 = vld [vmem:[%s5749_s15 + $0x3f0] sm:$0xff]  }
 0x952   : > { %4416 = vmatprep.subr.bf16.mxu1 %v4776_v7  ;;  %v4817_v6 = vld [vmem:[%s5749_s15 + $0x330] sm:$0xff]  }
 0x953   : > { %v4818_v7 = vld [vmem:[%s5749_s15 + $0x3b0] sm:$0xff]  }
 0x954   : > { %4395 = vmatpush3.bf16.msra.mxu0 %v4777_v8  ;;  %v4819_v8 = vld [vmem:[%s5749_s15 + $0x378] sm:$0xff]  }
 0x955   : > { %4417 = vmatpush3.bf16.msra.mxu1 %v4778_v15  ;;  %4396 = vmatprep.subr.bf16.mxu0 %v4779_v16  ;;  %v4820_v15 = vld [vmem:[%s5749_s15 + $0x3f8] sm:$0xff]  }
 0x956   : > { %4418 = vmatprep.subr.bf16.mxu1 %v4780_v17  ;;  %v4821_v16 = vld [vmem:[%s5749_s15 + $0x338] sm:$0xff]   ;;  %v2405_v17 = vmax.f32 %v6122_v9, 0.0 }
 0x958   : > { %4397 = vmatpush3.bf16.msra.mxu0 %v4781_v18  ;;  %v4822_v18 = vld [vmem:[%s5749_s15 + $0x3b8] sm:$0xff]   ;;  %s6248_s15 = scalar_lea.hbm %s6407_s6, %s4268_s4 }
 0x959   : > { %4419 = vmatpush3.bf16.msra.mxu1 %v4782_v45  ;;  %4398 = vmatprep.subr.bf16.mxu0 %v4783_v21  ;;  %v2421_v45 = vpack.c.bf16 %v2405_v17, %v2405_v17  ;;  %v2423_v21 = vpack.c.bf16 %v2407_v20, %v2407_v20 }
 0x95a   : > { %4420 = vmatprep.subr.bf16.mxu1 %v4784_v2 }
 0x95c   : > { %4399 = vmatpush3.bf16.msra.mxu0 %v4785_v37 }
 0x95d   : > { %4421 = vmatpush3.bf16.msra.mxu1 %v4786_v3  ;;  %4400 = vmatprep.subr.bf16.mxu0 %v4787_v23 }
 0x95e   : > { %4422 = vmatprep.subr.bf16.mxu1 %v4788_v46 }
 0x960   : > { %4401 = vmatpush3.bf16.msra.mxu0 %v4789_v63 }
 0x961   : > { %4423 = vmatpush3.bf16.msra.mxu1 %v4790_v48  ;;  %4430 = vmatprep.subr.bf16.mxu0 %v4791_v29 }
 0x962   : > { %4452 = vmatprep.subr.bf16.mxu1 %v4792_v49 }
 0x963   : > { %3646 = vmatmul.mubr.bf16.vlgmr.msra.gmra.mrb[44].mxu0 %v2417_v32 }
 0x964   : > { %3686 = vmatmul.mubr.bf16.vlgmr.msra.gmra.mrb[44].mxu1 %v2419_v33  ;;  %4431 = vmatpush3.bf16.msra.mxu0 %v4793_v11 }
 0x965   : > { %3725 = vmatprep.mubr.bf16.mxu0 %v2422_v35  ;;  %4453 = vmatpush3.bf16.msra.mxu1 %v4794_v12 }
 0x966   : > { %3765 = vmatprep.mubr.bf16.mxu1 %v2424_v13  ;;  %4432 = vmatprep.subr.bf16.mxu0 %v4795_v34 }
 0x967   : > { %4454 = vmatprep.subr.bf16.mxu1 %v4796_v22 }
 0x968   : > { %4433 = vmatpush3.bf16.msra.mxu0 %v4797_v36 }
 0x969   : > { %4455 = vmatpush3.bf16.msra.mxu1 %v4798_v38  ;;  %4434 = vmatprep.subr.bf16.mxu0 %v4799_v39 }
 0x96a   : > { %4456 = vmatprep.subr.bf16.mxu1 %v4800_v40 }
 0x96c   : > { %4435 = vmatpush3.bf16.msra.mxu0 %v4801_v41 }
 0x96d   : > { %4457 = vmatpush3.bf16.msra.mxu1 %v4802_v42  ;;  %4436 = vmatprep.subr.bf16.mxu0 %v4803_v50 }
 0x96e   : > { %4458 = vmatprep.subr.bf16.mxu1 %v4804_v51 }
 0x970   : > { %4437 = vmatpush3.bf16.msra.mxu0 %v4805_v52 }
 0x971   : > { %4459 = vmatpush3.bf16.msra.mxu1 %v4806_v53  ;;  %4438 = vmatprep.subr.bf16.mxu0 %v4807_v54 }
 0x972   : > { %4460 = vmatprep.subr.bf16.mxu1 %v4808_v55 }
 0x974   : > { %4439 = vmatpush3.bf16.msra.mxu0 %v4809_v57 }
 0x975   : > { %4461 = vmatpush3.bf16.msra.mxu1 %v4810_v58  ;;  %4440 = vmatprep.subr.bf16.mxu0 %v4811_v59 }
 0x976   : > { %4462 = vmatprep.subr.bf16.mxu1 %v4812_v60 }
 0x978   : > { %4441 = vmatpush3.bf16.msra.mxu0 %v4813_v61 }
 0x979   : > { %4463 = vmatpush3.bf16.msra.mxu1 %v4814_v0  ;;  %4442 = vmatprep.subr.bf16.mxu0 %v4815_v4 }
 0x97a   : > { %4464 = vmatprep.subr.bf16.mxu1 %v4816_v5 }
 0x97c   : > { %4443 = vmatpush3.bf16.msra.mxu0 %v4817_v6 }
 0x97d   : > { %4465 = vmatpush3.bf16.msra.mxu1 %v4818_v7  ;;  %4444 = vmatprep.subr.bf16.mxu0 %v4819_v8 }
 0x97e   : > { %4466 = vmatprep.subr.bf16.mxu1 %v4820_v15 }
 0x980   : > { %4445 = vmatpush3.bf16.msra.mxu0 %v4821_v16 }
 0x981   : > { %4467 = vmatpush3.bf16.msra.mxu1 %v4822_v18 }
 0x983   : > { %3726 = vmatmul.mubr.bf16.vlgmr.msra.gmra.mrb[48].mxu0 %v2421_v45 }
 0x984   : > { %3766 = vmatmul.mubr.bf16.vlgmr.msra.gmra.mrb[48].mxu1 %v2423_v21 }
 0x9f6   : > { %v4314_v25 = vpop.f32.mrb[36].mxu0  ;;  %v4336_v2 = vpop.f32.mrb[36].mxu1 }
 0x9f7   : > { %v4315_v9 = vpop.f32.mrb[37].mxu0  ;;  %v4337_v37 = vpop.f32.mrb[37].mxu1 }
 0x9f8   : > { %v4316_v1 = vadd.f32 %v4315_v9, %v4314_v25  ;;  %v4338_v3 = vadd.f32 %v4337_v37, %v4336_v2  ;;  %v4317_v23 = vpop.f32.mrb[38].mxu0  ;;  %v4339_v10 = vpop.f32.mrb[38].mxu1  ;;  %v3795_v2 = vrot.slane %v6232_v26, %v6081_v62 }
 0x9f9   : > { %v4318_v43 = vpop.f32.mrb[39].mxu0  ;;  %v4340_v46 = vpop.f32.mrb[39].mxu1 }
 0x9fa   : > { %v3488_v19 = vadd.f32 %v4316_v1, %v2684_v27 }
 0x9fc   : > { %v3528_v44 = vadd.f32 %v4338_v3, %v3488_v19 }
 0xa16   : > { %v4358_v63 = vpop.f32.mrb[40].mxu0  ;;  %v4380_v28 = vpop.f32.mrb[40].mxu1 }
 0xa17   : > { %v4359_v48 = vpop.f32.mrb[41].mxu0  ;;  %v4381_v29 = vpop.f32.mrb[41].mxu1 }
 0xa18   : > { %v4360_v24 = vadd.f32 %v4359_v48, %v4358_v63  ;;  %v4382_v49 = vadd.f32 %v4381_v29, %v4380_v28  ;;  %v4361_v14 = vpop.f32.mrb[42].mxu0  ;;  %v4383_v31 = vpop.f32.mrb[42].mxu1 }
 0xa19   : > { %v4362_v11 = vpop.f32.mrb[43].mxu0  ;;  %v4384_v47 = vpop.f32.mrb[43].mxu1 }
 0xa1a   : > { %v3568_v32 = vadd.f32 %v4360_v24, %v3528_v44 }
 0xa1c   : > { %v3608_v12 = vadd.f32 %v4382_v49, %v3568_v32 }
 0xa36   : > { %v4402_v33 = vpop.f32.mrb[44].mxu0 }
 0xa37   : > { %v4424_v34 = vpop.f32.mrb[44].mxu1  ;;  %v4403_v35 = vpop.f32.mrb[45].mxu0 }
 0xa38   : > { %v4404_v22 = vadd.f32 %v4403_v35, %v4402_v33  ;;  %v4425_v13 = vpop.f32.mrb[45].mxu1  ;;  %v4405_v36 = vpop.f32.mrb[46].mxu0 }
 0xa39   : > { %v4426_v38 = vadd.f32 %v4425_v13, %v4424_v34  ;;  %v4427_v39 = vpop.f32.mrb[46].mxu1  ;;  %v4406_v40 = vpop.f32.mrb[47].mxu0 }
 0xa3a   : > { %v3648_v41 = vadd.f32 %v4404_v22, %v3608_v12  ;;  %v4428_v42 = vpop.f32.mrb[47].mxu1 }
 0xa3c   : > { %v3688_v50 = vadd.f32 %v4426_v38, %v3648_v41 }
 0xa56   : > { %v4446_v51 = vpop.f32.mrb[48].mxu0 }
 0xa57   : > { %v4468_v52 = vpop.f32.mrb[48].mxu1  ;;  %v4447_v53 = vpop.f32.mrb[49].mxu0 }
 0xa58   : > { %v4448_v54 = vadd.f32 %v4447_v53, %v4446_v51  ;;  %v4469_v55 = vpop.f32.mrb[49].mxu1  ;;  %v4449_v57 = vpop.f32.mrb[50].mxu0 }
 0xa59   : > { %v4470_v58 = vadd.f32 %v4469_v55, %v4468_v52  ;;  %v4471_v59 = vpop.f32.mrb[50].mxu1  ;;  %v4450_v60 = vpop.f32.mrb[51].mxu0 }
 0xa5a   : > { %v3728_v61 = vadd.f32 %v4448_v54, %v3688_v50  ;;  %v4472_v0 = vpop.f32.mrb[51].mxu1 }
 0xa5c   : > { %v3768_v4 = vadd.f32 %v4470_v58, %v3728_v61 }
 0xa5e   : > { %v3773_v5 = vadd.f32 %v3768_v4, %v5977_v30  ;;  %v3790_v30 = vrot.slane %v6232_v26, %v6112_v56 }
 0xa60   : > { %v3774_v6 = vsel %vm627_vm2, %v3773_v5, 0.0 }
 0xa61   : > { %3775 = vadd.xlane.f32.xlu0 %v3774_v6 }
 0xaee   : > { %v3776_v7 = vpop.xlane.xlu0 %3775 }
 0xaef   : > { %v3777_v8 = vmul.f32 0.03125, %v3776_v7 }
 0xaf1   : > { %v3778_v15 = vsub.f32 %v3773_v5, %v3777_v8 }
 0xaf3   : > { %v3779_v16 = vmul.f32 %v3778_v15, %v3778_v15 }
 0xaf5   : > { %v3780_v17 = vsel %vm627_vm2, %v3779_v16, 0.0 }
 0xaf6   : > { %3781 = vadd.xlane.f32.xlu0 %v3780_v17 }
 0xb83   : > { %v3782_v18 = vpop.xlane.xlu0 %3781 }
 0xb84   : > { %v3783_v20 = vmul.f32 0.03125, %v3782_v18 }
 0xb86   : > { %v3784_v45 = vadd.f32 1e-05, %v3783_v20 }
 0xb88   : > { %4841 = vrsqrt.f32 %v3784_v45 }
 0xb92   : > { %v4842_v21 = vpop.eup %4841 }
 0xb93   : > { %v3786_v25 = vmul.f32 %v4842_v21, %v3778_v15 }
 0xb95   : > { %v3791_v27 = vmul.f32 %v3790_v30, %v3786_v25 }
 0xb97   : > { %v3796_v9 = vadd.f32 %v3795_v2, %v3791_v27 }
 0xb99   : > { %3797 = vst.msk [vmem:[%s5767_s10] sm:$0xff] %vm627_vm2, %v3796_v9 }
 0xb9a   : > { %5098 = shalt.err (!%p5095_p13)
}
 0xb9b   : > { %s5099_s20 = scalar_lea.hbm %s6248_s15, 128  ;;  %s5103_s1 = scalar_lea.hbm %s6407_s6, 256 }
 0xb9c   : > { %p5100_p9 = scmp.ne.s32.totalorder %s6248_s15, %s5099_s20  ;;  %p5104_p6 = scmp.lt.u32.totalorder %s6248_s15, %s6407_s6 }
 0xb9d   : > { %p5105_p11 = scmp.lt.u32.totalorder %s5103_s1, %s5099_s20  ;;  %p5107_p8 = scmp.lt.u32.totalorder %s5099_s20, %s6248_s15 }
 0xb9e   : > { %p5101_p10 = pnand %p5100_p9, %p6408_p12 }
 0xb9f   : > { %p5106_p4 = por %p5105_p11, %p5104_p6 }
 0xba0   : > { %p5102_p1 = pneg %p5101_p10 }
 0xba1   : > { %p5108_p0 = por %p5107_p8, %p5106_p4 }
 0xba3   : > { %p5109_p5 = pnand %p5108_p0, %p5102_p1 }
 0xba5   : > { %5112 = shalt.err (!%p5109_p5)
}
 0xba6   : > { %4554 = dma.vmem_to_hbm [thread:$0]  (%p6408_p12), %s6250_s19, 128, %s6248_s15, %s3799_s26  }
 0xba7 PF: > { %s6409_s22 = sld [smem:[#allocation29_spill]]  ;;  %s6410_s11 = sld [smem:[#allocation24_spill]] }
 0xba8   : > { %s6411_s25 = sld [smem:[#allocation34_spill]] }
 0xbad   : > { %p4586_p2 = scmp.ge.s32.totalorder %s6409_s22, 2  ;;  %s3824_s21 = sand.u32 1, %s6410_s11  }
 0xbae   : > { %p6412_p7 = scmp.ne.s32.totalorder %s6411_s25, 0  ;;  %s3825_s12 = scalar_lea.sflag [#allocation4], %s3824_s21 }
 0xbb0   : > { %p4582_p3 = pnand %p4586_p2, %p6412_p7 }
 0xbb2   : > { %5178 = dma.done.wait (!%p4582_p3), %s3825_s12, 128  }
 0xbb3   : > { %5180 = vsyncadd (!%p4582_p3), %s3825_s12, 4294967168  ;;  %s36_s15 = sadd.s32 1, %s6409_s22   ;;  %s6413_s14 = sld [smem:[#allocation23_spill]] }
 0xbb4   : > { %p33_p13 = scmp.ge.s32.totalorder %s36_s15, 6   ;;  %s6414_s29 = sld [smem:[#allocation32_spill]] }
 0xbb5   : > { %s6415_s5 = sld [smem:[#allocation25_spill]]  ;;  %s6416_s10 = sld [smem:[#allocation33_spill]] }
 0xbb6   : > { %s6417_s12 = sld [smem:[#allocation28_spill]]  ;;  %s6418_s4 = sld [smem:[#allocation30_spill]] }
 0xbb7   : > { %s6419_s19 = sld [smem:[#allocation31_spill]]  ;;  %s6420_s27 = smov %s5187_s28 }
 0xbb8   : > { %s6422_s30 = smov %s5199_s9  ;;  %s6424_s11 = smov %s5215_s13 }
 0xbb9   : > { %s6421_s28 = smov %s6413_s14  ;;  %35 = sbr.rel (!%p33_p13) target bundleno = 27 (0x1b), region = 186 }
 0xbbb   : > { %s6423_s9 = smov %s6415_s5 }
 0xbbc   : > { %s6425_s13 = smov %s6418_s4 }
 0xbbd   : > { %s6426_s14 = smov %s6419_s19 }
 0xbc0   :  { %3830 = vsyncpa [#allocation3], 1 }
 0xbc1   :  { %3832 = vsyncpa [#allocation3 + $0x1], 1 }
 0xbc2   :  { %3833 = vsyncpa [#allocation6], 1 }
 0xbc3   :  { %3835 = vsyncpa [#allocation6 + $0x1], 1 }
 0xbc4   :  { %3836 = vsyncpa [#allocation9], 1 }
 0xbc5   :  { %3838 = vsyncpa [#allocation9 + $0x1], 1 }
 0xbc6   :  { %3839 = vsyncpa [#allocation12], 1 }
 0xbc7   :  { %3841 = vsyncpa [#allocation12 + $0x1], 1 }
 0xbc8   :  { %3842 = vsyncpa [#allocation15], 1 }
 0xbc9   :  { %3844 = vsyncpa [#allocation15 + $0x1], 1 }
 0xbca   :  { %3845 = vsyncpa [#allocation4], 1 }
 0xbcb   :  { %3847 = vsyncpa [#allocation4 + $0x1], 1 }

</bundles_post_ra>
